<compile_context>
chip_gen: v6e
topology: v6e:2x2x1
jax: 0.10.0
libtpu: 0.0.40
codegen_flags: <defaults>
</compile_context>

<pallas_src>
import functools

import numpy as np
import jax
import jax.numpy as jnp
from jax.experimental import pallas as pl
from jax.experimental.pallas import tpu as pltpu


BN_EPS = 1e-5
CONV3_CHUNK = 512      # output-channel chunk for the fused conv3 + max-pool (sweep {256, 512})
FC3_PAD = 128          # pad the 9-wide fc3 output to 128 lanes (unmasked vst)


# ----------------------------------------------------------------------------
# Kernel 1: point MLP (conv1 -> conv2 -> conv3) + fused global max pool.
#   x tile         : (1, 3, tile_n) f32   (channels on sublanes, points on lanes)
#   w1/b1          : (64, 3) f32 / (64, 1) f32            (VPU MACs, K=3)
#   w2/b2          : (64, 128) bf16 / (1, 128) f32
#   w3/b3          : (128, 1024) bf16 / (1, 1024) f32
#   pooled output  : (1, 1, 1024) f32  (resident running-max across nt)
# ----------------------------------------------------------------------------
def _conv_pool_kernel(x_ref, w1_ref, b1_ref, w2_ref, b2_ref, w3_ref, b3_ref,
                      pooled_ref, *, n_points, tile_n, tiles_per_split,
                      needs_mask, conv3_chunk):
    s = pl.program_id(1)       # point-axis split (dual-TC utilization)
    nt = pl.program_id(2)      # point tile within the split (reduction axis)

    x = x_ref[0]                                        # (3, tile_n) f32

    # conv1 (+bn1) + relu: K=3 would waste >97% of an MXU pass, so do three
    # VPU outer-product multiply-adds in channels-first layout instead.
    w1 = w1_ref[...]                                    # (64, 3) f32
    h = (w1[:, 0:1] * x[0:1, :]
         + w1[:, 1:2] * x[1:2, :]
         + w1[:, 2:3] * x[2:3, :]
         + b1_ref[...])                                 # (64, tile_n) f32
    h = jnp.maximum(h, 0.0)

    # Single layout flip per tile: channels-first -> points-major (f32 XLU
    # transpose, hidden under the MXU phases that follow).
    h = jnp.transpose(h)                                # (tile_n, 64) f32

    # conv2 (+bn2) + relu: bf16 operands, f32 accumulation on the MXU.
    h = jnp.maximum(
        jnp.dot(h.astype(jnp.bfloat16), w2_ref[...],
                preferred_element_type=jnp.float32) + b2_ref[...],
        0.0)                                            # (tile_n, 128) f32
    h_bf = h.astype(jnp.bfloat16)

    # Valid-point mask for the padded tail (only traced when padding exists).
    # Post-ReLU activations are >= 0, so masking padded points to 0 is exact.
    if needs_mask:
        start = (s * tiles_per_split + nt) * tile_n
        pt = jax.lax.broadcasted_iota(jnp.int32, (tile_n, 1), 0)
        valid = pt < (n_points - start)                 # (tile_n, 1) bool

    # Initialize the resident pooled block once per (batch, split); 0 is the
    # identity element for the post-ReLU running max.
    @pl.when(nt == 0)
    def _():
        pooled_ref[...] = jnp.zeros_like(pooled_ref)

    # conv3 (+bn3) + relu, output-channel chunked with the global max fused in;
    # each chunk's maxima land straight in the resident output block, so the
    # full (tile_n, 1024) activation never exists as one live intermediate.
    for c in range(0, 1024, conv3_chunk):
        part = jnp.dot(h_bf, w3_ref[:, c:c + conv3_chunk],
                       preferred_element_type=jnp.float32)
        part = jnp.maximum(part + b3_ref[:, c:c + conv3_chunk], 0.0)
        if needs_mask:
            part = jnp.where(valid, part, 0.0)
        cmax = jnp.max(part, axis=0, keepdims=True)     # (1, conv3_chunk)
        pooled_ref[0, :, c:c + conv3_chunk] = jnp.maximum(
            pooled_ref[0, :, c:c + conv3_chunk], cmax)


# ----------------------------------------------------------------------------
# Kernel 2: FC head on the whole batch at once (M = B rows on the MXU).
#   g      : (B, 1024) f32
#   w4/w5  : bf16, b4/b5 f32
#   w6     : (256, 128) bf16 (fc3 padded from 9 to 128 output lanes), b6 f32
#   output : (B, 128) f32 (identity add + slice to 9 done in the wrapper)
# ----------------------------------------------------------------------------
def _fc_head_kernel(g_ref, w4_ref, b4_ref, w5_ref, b5_ref, w6_ref, b6_ref, o_ref):
    g = g_ref[...].astype(jnp.bfloat16)                 # (B, 1024)
    f = jnp.maximum(
        jnp.dot(g, w4_ref[...], preferred_element_type=jnp.float32) + b4_ref[...],
        0.0)                                            # (B, 512)
    f = jnp.maximum(
        jnp.dot(f.astype(jnp.bfloat16), w5_ref[...],
                preferred_element_type=jnp.float32) + b5_ref[...],
        0.0)                                            # (B, 256)
    o_ref[...] = (jnp.dot(f.astype(jnp.bfloat16), w6_ref[...],
                          preferred_element_type=jnp.float32) + b6_ref[...])


# ----------------------------------------------------------------------------
# Parameter construction (deterministic) + BN fusion (plain-JAX glue).
# ----------------------------------------------------------------------------
def _make_params(key):
    """Create deterministic parameters matching STN3d's __init__ shapes."""
    dims = [
        ("conv1", 3, 64, True),
        ("conv2", 64, 128, True),
        ("conv3", 128, 1024, True),
        ("fc1", 1024, 512, True),
        ("fc2", 512, 256, True),
        ("fc3", 256, 9, False),
    ]
    params = {}
    for name, cin, cout, has_bn in dims:
        key, kw, kb, kg, kbt, km, kv = jax.random.split(key, 7)
        w = jax.random.normal(kw, (cout, cin), jnp.float32) * 0.05   # PyTorch (out, in)
        b = jax.random.normal(kb, (cout,), jnp.float32) * 0.05
        params[name] = {"w": w, "b": b}
        if has_bn:
            params[name]["bn"] = {
                "gamma": 1.0 + 0.1 * jax.random.normal(kg, (cout,), jnp.float32),
                "beta": 0.1 * jax.random.normal(kbt, (cout,), jnp.float32),
                "mean": 0.1 * jax.random.normal(km, (cout,), jnp.float32),
                "var": jnp.abs(jax.random.normal(kv, (cout,), jnp.float32)) + 0.5,
            }
    return params


def _fuse_bn(layer):
    """Fuse an (optional) eval-mode BatchNorm into (Cout, Cin) weight + (Cout,) bias."""
    w, b = layer["w"], layer["b"]
    if "bn" in layer:
        bn = layer["bn"]
        scale = bn["gamma"] / jnp.sqrt(bn["var"] + BN_EPS)
        w = w * scale[:, None]
        b = scale * (b - bn["mean"]) + bn["beta"]
    return w, b


def _fused_weights(params):
    w1, b1 = _fuse_bn(params["conv1"])          # (64, 3),    (64,)
    w2, b2 = _fuse_bn(params["conv2"])          # (128, 64)
    w3, b3 = _fuse_bn(params["conv3"])          # (1024, 128)
    w4, b4 = _fuse_bn(params["fc1"])            # (512, 1024)
    w5, b5 = _fuse_bn(params["fc2"])            # (256, 512)
    w6, b6 = _fuse_bn(params["fc3"])            # (9, 256)

    conv_w = (
        w1.astype(jnp.float32),     b1[:, None].astype(jnp.float32),   # (64,3), (64,1)
        w2.T.astype(jnp.bfloat16),  b2[None, :].astype(jnp.float32),   # (64,128), (1,128)
        w3.T.astype(jnp.bfloat16),  b3[None, :].astype(jnp.float32),   # (128,1024), (1,1024)
    )
    w6p = jnp.pad(w6.T, ((0, 0), (0, FC3_PAD - 9))).astype(jnp.bfloat16)   # (256, 128)
    b6p = jnp.pad(b6[None, :], ((0, 0), (0, FC3_PAD - 9))).astype(jnp.float32)
    fc_w = (
        w4.T.astype(jnp.bfloat16), b4[None, :].astype(jnp.float32),    # (1024,512), (1,512)
        w5.T.astype(jnp.bfloat16), b5[None, :].astype(jnp.float32),    # (512,256),  (1,256)
        w6p, b6p,
    )
    return conv_w, fc_w


def _round_up(x, m):
    return ((x + m - 1) // m) * m


# ----------------------------------------------------------------------------
# Wrapper calling the two pallas_calls.
# ----------------------------------------------------------------------------
def stn3d_forward(x_ncw, params, *, tile_n=1024, conv3_chunk=CONV3_CHUNK):
    """x_ncw: (B, 3, N) float32 (PyTorch NCW layout).  Returns (B, 3, 3).

    tile_n: point-tile size; sweep 1024-2048 per generation (bigger amortizes
    per-grid-step overhead; ~4-8 MiB resident footprint, under default VMEM).
    """
    B, C, N = x_ncw.shape
    assert C == 3
    conv_w, fc_w = _fused_weights(params)

    # Point tiling: clamp to N, keep the tile 128-lane aligned, pad + mask tail.
    tile = _round_up(min(tile_n, _round_up(N, 128)), 128)
    n_tiles = pl.cdiv(N, tile)
    # v7x has 2 TensorCores: the "parallel" batch axis only splits work for even
    # B >= 2, so for odd B (esp. B == 1) split the point axis into 2 parallel
    # halves producing partial maxima, combined with jnp.max in the wrapper.
    splits = 2 if (B % 2 == 1 and n_tiles >= 2) else 1
    tiles_per_split = pl.cdiv(n_tiles, splits)
    n_pad = splits * tiles_per_split * tile

    x = x_ncw.astype(jnp.float32)
    if n_pad != N:
        x = jnp.pad(x, ((0, 0), (0, 0), (0, n_pad - N)))

    kernel = functools.partial(
        _conv_pool_kernel,
        n_points=N, tile_n=tile, tiles_per_split=tiles_per_split,
        needs_mask=(n_pad != N), conv3_chunk=conv3_chunk)

    def _const_spec(arr):
        zero = (0,) * arr.ndim
        return pl.BlockSpec(arr.shape, lambda b, s, nt, _z=zero: _z)

    # ---- Kernel 1: conv stack + fused global max pool -> (B, splits, 1024) ----
    pooled = pl.pallas_call(
        kernel,
        out_shape=jax.ShapeDtypeStruct((B, splits, 1024), jnp.float32),
        grid_spec=pltpu.PrefetchScalarGridSpec(
            num_scalar_prefetch=0,
            grid=(B, splits, tiles_per_split),
            in_specs=[pl.BlockSpec(
                          (1, 3, tile),
                          lambda b, s, nt, _t=tiles_per_split: (b, 0, s * _t + nt))]
                     + [_const_spec(a) for a in conv_w],
            out_specs=pl.BlockSpec((1, 1, 1024), lambda b, s, nt: (b, s, 0)),
        ),
        # Batch + point-split axes parallel (2-TC split on v7x); the per-split
        # point-tile axis is the running-max reduction with a resident output.
        # Resident footprint (weights + activations) is ~4-8 MiB at tile_n
        # 1024-2048, so the default scoped VMEM limit is ample on v5e/v6e/v7x.
        compiler_params=pltpu.CompilerParams(
            dimension_semantics=("parallel", "parallel", "arbitrary")),
    )(x, *conv_w)

    # Combine point-split partial maxima (no-op-ish when splits == 1).
    g = jnp.max(pooled, axis=1)                          # (B, 1024)

    # ---- Kernel 2: FC head on the stacked pooled features (M = B rows) ----
    fc_out = pl.pallas_call(
        _fc_head_kernel,
        out_shape=jax.ShapeDtypeStruct((B, FC3_PAD), jnp.float32),
        in_specs=[pl.BlockSpec(memory_space=pltpu.MemorySpace.VMEM)] * 7,
        out_specs=pl.BlockSpec(memory_space=pltpu.MemorySpace.VMEM),
    )(g, *fc_w)

    # Identity-matrix add + slice of the 9 real outputs in plain JAX.
    iden = jnp.array([1., 0., 0., 0., 1., 0., 0., 0., 1.], dtype=jnp.float32)
    return (fc_out[:, :9] + iden[None, :]).reshape(B, 3, 3)


# ----------------------------------------------------------------------------
# Pure-JAX reference (same bf16-weight math) for a correctness check.
# ----------------------------------------------------------------------------
def stn3d_reference(x_ncw, params):
    (w1, b1, w2, b2, w3, b3), (w4, b4, w5, b5, w6, b6) = _fused_weights(params)
    x = jnp.transpose(x_ncw, (0, 2, 1)).astype(jnp.float32)         # (B, N, 3)
    h = jnp.maximum(jnp.dot(x, w1.T) + b1[:, 0][None, None, :], 0.0)
    h = jnp.maximum(jnp.dot(h.astype(jnp.bfloat16), w2,
                            preferred_element_type=jnp.float32) + b2, 0.0)
    h = jnp.maximum(jnp.dot(h.astype(jnp.bfloat16), w3,
                            preferred_element_type=jnp.float32) + b3, 0.0)
    g = jnp.max(h, axis=1)                                          # (B, 1024)
    f = jnp.maximum(jnp.dot(g.astype(jnp.bfloat16), w4,
                            preferred_element_type=jnp.float32) + b4, 0.0)
    f = jnp.maximum(jnp.dot(f.astype(jnp.bfloat16), w5,
                            preferred_element_type=jnp.float32) + b5, 0.0)
    out = jnp.dot(f.astype(jnp.bfloat16), w6,
                  preferred_element_type=jnp.float32) + b6
    iden = jnp.array([1., 0., 0., 0., 1., 0., 0., 0., 1.], dtype=jnp.float32)
    return (out[:, :9] + iden[None, :]).reshape(-1, 3, 3)


if __name__ == "__main__":
    key = jax.random.PRNGKey(0)
    key, kx1, kx2, kx3 = jax.random.split(key, 4)
    params = _make_params(key)

    def _check(x, **kw):
        y = jax.block_until_ready(stn3d_forward(x, params, **kw))
        y_ref = stn3d_reference(x, params)
        assert y.shape == (x.shape[0], 3, 3)
        # bf16 weights/activations (f32 accumulation) => looser tolerance than f32.
        np.testing.assert_allclose(np.asarray(y), np.asarray(y_ref),
                                   rtol=2e-2, atol=2e-2)

    # 1) Multi-tile running max + masked padded tail (300 -> 384 pts, 3 tiles).
    _check(jax.random.normal(kx1, (2, 3, 300), jnp.float32), tile_n=128)
    # 2) Odd batch (B=1): point axis split into 2 parallel halves (dual-TC path),
    #    with heavy padding in the second half.
    _check(jax.random.normal(kx2, (1, 3, 520), jnp.float32), tile_n=256)
    # 3) Default (large) tile, single-tile path, no padding.
    _check(jax.random.normal(kx3, (2, 3, 256), jnp.float32))

    print("KERNEL_OK")
</pallas_src>

<mosaic_0001>
module attributes {stable_mosaic.version = 11 : i64} {
  func.func @_conv_pool_kernel(%arg0: i32, %arg1: i32, %arg2: i32, %arg3: memref<1x3x128xf32, #tpu.memory_space<vmem>>, %arg4: memref<64x3xf32, #tpu.memory_space<vmem>>, %arg5: memref<64x1xf32, #tpu.memory_space<vmem>>, %arg6: memref<64x128xbf16, #tpu.memory_space<vmem>>, %arg7: memref<1x128xf32, #tpu.memory_space<vmem>>, %arg8: memref<128x1024xbf16, #tpu.memory_space<vmem>>, %arg9: memref<1x1024xf32, #tpu.memory_space<vmem>>, %arg10: memref<1x1x1024xf32, #tpu.memory_space<vmem>>) attributes {dimension_semantics = [#tpu.dimension_semantics<parallel>, #tpu.dimension_semantics<parallel>, #tpu.dimension_semantics<arbitrary>], iteration_bounds = array<i64: 2, 1, 3>, scalar_prefetch = 0 : i64, scratch_operands = 0 : i64, tpu.core_type = #tpu.core_type<tc>, window_params = [{transform_indices = @transform_0, window_bounds = array<i64: 1, 3, 128>}, {pipeline_mode = #tpu.pipeline_mode<synchronous>, transform_indices = @transform_1, window_bounds = array<i64: 64, 3>}, {pipeline_mode = #tpu.pipeline_mode<synchronous>, transform_indices = @transform_2, window_bounds = array<i64: 64, 1>}, {pipeline_mode = #tpu.pipeline_mode<synchronous>, transform_indices = @transform_3, window_bounds = array<i64: 64, 128>}, {pipeline_mode = #tpu.pipeline_mode<synchronous>, transform_indices = @transform_4, window_bounds = array<i64: 1, 128>}, {pipeline_mode = #tpu.pipeline_mode<synchronous>, transform_indices = @transform_5, window_bounds = array<i64: 128, 1024>}, {pipeline_mode = #tpu.pipeline_mode<synchronous>, transform_indices = @transform_6, window_bounds = array<i64: 1, 1024>}, {transform_indices = @transform_7, window_bounds = array<i64: 1, 1, 1024>}]} {
    %c0 = arith.constant 0 : index
    %c0_0 = arith.constant 0 : index
    %c0_1 = arith.constant 0 : index
    %0 = vector.load %arg3[%c0, %c0_0, %c0_1] : memref<1x3x128xf32, #tpu.memory_space<vmem>>, vector<1x3x128xf32>
    %1 = vector.shape_cast %0 : vector<1x3x128xf32> to vector<3x128xf32>
    %c0_2 = arith.constant 0 : index
    %c0_3 = arith.constant 0 : index
    %2 = vector.load %arg4[%c0_2, %c0_3] : memref<64x3xf32, #tpu.memory_space<vmem>>, vector<64x3xf32>
    %3 = vector.extract_strided_slice %2 {offsets = [0, 0], sizes = [64, 1], strides = [1, 1]} : vector<64x3xf32> to vector<64x1xf32>
    %4 = vector.extract_strided_slice %1 {offsets = [0, 0], sizes = [1, 128], strides = [1, 1]} : vector<3x128xf32> to vector<1x128xf32>
    %5 = vector.broadcast %3 : vector<64x1xf32> to vector<64x128xf32>
    %6 = vector.broadcast %4 : vector<1x128xf32> to vector<64x128xf32>
    %7 = arith.mulf %5, %6 : vector<64x128xf32>
    %8 = vector.extract_strided_slice %2 {offsets = [0, 1], sizes = [64, 1], strides = [1, 1]} : vector<64x3xf32> to vector<64x1xf32>
    %9 = vector.extract_strided_slice %1 {offsets = [1, 0], sizes = [1, 128], strides = [1, 1]} : vector<3x128xf32> to vector<1x128xf32>
    %10 = vector.broadcast %8 : vector<64x1xf32> to vector<64x128xf32>
    %11 = vector.broadcast %9 : vector<1x128xf32> to vector<64x128xf32>
    %12 = arith.mulf %10, %11 : vector<64x128xf32>
    %13 = arith.addf %7, %12 : vector<64x128xf32>
    %14 = vector.extract_strided_slice %2 {offsets = [0, 2], sizes = [64, 1], strides = [1, 1]} : vector<64x3xf32> to vector<64x1xf32>
    %15 = vector.extract_strided_slice %1 {offsets = [2, 0], sizes = [1, 128], strides = [1, 1]} : vector<3x128xf32> to vector<1x128xf32>
    %16 = vector.broadcast %14 : vector<64x1xf32> to vector<64x128xf32>
    %17 = vector.broadcast %15 : vector<1x128xf32> to vector<64x128xf32>
    %18 = arith.mulf %16, %17 : vector<64x128xf32>
    %19 = arith.addf %13, %18 : vector<64x128xf32>
    %c0_4 = arith.constant 0 : index
    %c0_5 = arith.constant 0 : index
    %20 = vector.load %arg5[%c0_4, %c0_5] : memref<64x1xf32, #tpu.memory_space<vmem>>, vector<64x1xf32>
    %21 = vector.broadcast %20 : vector<64x1xf32> to vector<64x128xf32>
    %22 = arith.addf %19, %21 : vector<64x128xf32>
    %cst = arith.constant 0.000000e+00 : f32
    %23 = vector.broadcast %cst : f32 to vector<64x128xf32>
    %24 = arith.maximumf %22, %23 : vector<64x128xf32>
    %25 = tpu.transpose %24, [1, 0] : vector<64x128xf32> -> vector<128x64xf32>
    %26 = arith.truncf %25 : vector<128x64xf32> to vector<128x64xbf16>
    %c0_6 = arith.constant 0 : index
    %c0_7 = arith.constant 0 : index
    %27 = vector.load %arg6[%c0_6, %c0_7] : memref<64x128xbf16, #tpu.memory_space<vmem>>, vector<64x128xbf16>
    %cst_8 = arith.constant dense<0.000000e+00> : vector<128x128xf32>
    %28 = tpu.matmul %26, %27, %cst_8 {dimension_numbers = #tpu.dot_dimension_numbers<[1], [0], [0], [1], [0, 0, 1, 1], [], []>} : vector<128x64xbf16>, vector<64x128xbf16>, vector<128x128xf32> -> vector<128x128xf32>
    %c0_9 = arith.constant 0 : index
    %c0_10 = arith.constant 0 : index
    %29 = vector.load %arg7[%c0_9, %c0_10] : memref<1x128xf32, #tpu.memory_space<vmem>>, vector<1x128xf32>
    %30 = vector.broadcast %29 : vector<1x128xf32> to vector<128x128xf32>
    %31 = arith.addf %28, %30 : vector<128x128xf32>
    %cst_11 = arith.constant 0.000000e+00 : f32
    %32 = vector.broadcast %cst_11 : f32 to vector<128x128xf32>
    %33 = arith.maximumf %31, %32 : vector<128x128xf32>
    %34 = arith.truncf %33 : vector<128x128xf32> to vector<128x128xbf16>
    %c3_i32 = arith.constant 3 : i32
    %35 = arith.muli %arg1, %c3_i32 : i32
    %36 = arith.addi %35, %arg2 : i32
    %c128_i32 = arith.constant 128 : i32
    %37 = arith.muli %36, %c128_i32 : i32
    %38 = tpu.iota {dimensions = array<i32: 0>} : vector<128x1xi32>
    %c300_i32 = arith.constant 300 : i32
    %39 = arith.subi %c300_i32, %37 : i32
    %40 = vector.broadcast %39 : i32 to vector<128x1xi32>
    %41 = arith.cmpi slt, %38, %40 : vector<128x1xi32>
    %c0_i32 = arith.constant 0 : i32
    %42 = arith.cmpi eq, %arg2, %c0_i32 : i32
    %43 = arith.extui %42 : i1 to i32
    %c0_i32_12 = arith.constant 0 : i32
    %44 = arith.cmpi ne, %43, %c0_i32_12 : i32
    scf.if %44 {
      %cst_40 = arith.constant 0.000000e+00 : f32
      %83 = vector.broadcast %cst_40 : f32 to vector<1x1x1024xf32>
      %c0_41 = arith.constant 0 : index
      %c0_42 = arith.constant 0 : index
      %c0_43 = arith.constant 0 : index
      %84 = vector.load %arg10[%c0_41, %c0_42, %c0_43] : memref<1x1x1024xf32, #tpu.memory_space<vmem>>, vector<1x1x1024xf32>
      tpu.vector_store %arg10[%c0_41, %c0_42, %c0_43], %83 {strides = array<i32>} : memref<1x1x1024xf32, #tpu.memory_space<vmem>>, vector<1x1x1024xf32>,
    } else {
    }
    %c0_13 = arith.constant 0 : index
    %c0_14 = arith.constant 0 : index
    %45 = vector.load %arg8[%c0_13, %c0_14] : memref<128x1024xbf16, #tpu.memory_space<vmem>>, vector<128x512xbf16>
    %cst_15 = arith.constant dense<0.000000e+00> : vector<128x512xf32>
    %46 = tpu.matmul %34, %45, %cst_15 {dimension_numbers = #tpu.dot_dimension_numbers<[1], [0], [0], [1], [0, 0, 1, 1], [], []>} : vector<128x128xbf16>, vector<128x512xbf16>, vector<128x512xf32> -> vector<128x512xf32>
    %c0_16 = arith.constant 0 : index
    %c0_17 = arith.constant 0 : index
    %47 = vector.load %arg9[%c0_16, %c0_17] : memref<1x1024xf32, #tpu.memory_space<vmem>>, vector<1x512xf32>
    %48 = vector.broadcast %47 : vector<1x512xf32> to vector<128x512xf32>
    %49 = arith.addf %46, %48 : vector<128x512xf32>
    %cst_18 = arith.constant 0.000000e+00 : f32
    %50 = vector.broadcast %cst_18 : f32 to vector<128x512xf32>
    %51 = arith.maximumf %49, %50 : vector<128x512xf32>
    %cst_19 = arith.constant 0.000000e+00 : f32
    %52 = vector.shape_cast %41 : vector<128x1xi1> to vector<128x1xi1>
    %53 = vector.broadcast %52 : vector<128x1xi1> to vector<128x512xi1>
    %54 = vector.broadcast %cst_19 : f32 to vector<128x512xf32>
    %55 = arith.select %53, %51, %54 : vector<128x512xi1>, vector<128x512xf32>
    %cst_20 = arith.constant dense<0xFF800000> : vector<512xf32>
    %56 = vector.multi_reduction <maximumf>, %55, %cst_20 [0] : vector<128x512xf32> to vector<512xf32>
    %57 = vector.shape_cast %56 : vector<512xf32> to vector<1x512xf32>
    %c0_21 = arith.constant 0 : index
    %c0_22 = arith.constant 0 : index
    %c0_23 = arith.constant 0 : index
    %58 = vector.load %arg10[%c0_21, %c0_22, %c0_23] : memref<1x1x1024xf32, #tpu.memory_space<vmem>>, vector<1x1x512xf32>
    %59 = vector.shape_cast %58 : vector<1x1x512xf32> to vector<1x512xf32>
    %60 = arith.maximumf %59, %57 : vector<1x512xf32>
    %c0_24 = arith.constant 0 : index
    %c0_25 = arith.constant 0 : index
    %c0_26 = arith.constant 0 : index
    %61 = vector.load %arg10[%c0_24, %c0_25, %c0_26] : memref<1x1x1024xf32, #tpu.memory_space<vmem>>, vector<1x1x512xf32>
    %62 = vector.shape_cast %61 : vector<1x1x512xf32> to vector<1x512xf32>
    %63 = vector.shape_cast %60 : vector<1x512xf32> to vector<1x1x512xf32>
    tpu.vector_store %arg10[%c0_24, %c0_25, %c0_26], %63 {strides = array<i32>} : memref<1x1x1024xf32, #tpu.memory_space<vmem>>, vector<1x1x512xf32>,
    %c0_27 = arith.constant 0 : index
    %c512 = arith.constant 512 : index
    %64 = vector.load %arg8[%c0_27, %c512] : memref<128x1024xbf16, #tpu.memory_space<vmem>>, vector<128x512xbf16>
    %cst_28 = arith.constant dense<0.000000e+00> : vector<128x512xf32>
    %65 = tpu.matmul %34, %64, %cst_28 {dimension_numbers = #tpu.dot_dimension_numbers<[1], [0], [0], [1], [0, 0, 1, 1], [], []>} : vector<128x128xbf16>, vector<128x512xbf16>, vector<128x512xf32> -> vector<128x512xf32>
    %c0_29 = arith.constant 0 : index
    %c512_30 = arith.constant 512 : index
    %66 = vector.load %arg9[%c0_29, %c512_30] : memref<1x1024xf32, #tpu.memory_space<vmem>>, vector<1x512xf32>
    %67 = vector.broadcast %66 : vector<1x512xf32> to vector<128x512xf32>
    %68 = arith.addf %65, %67 : vector<128x512xf32>
    %cst_31 = arith.constant 0.000000e+00 : f32
    %69 = vector.broadcast %cst_31 : f32 to vector<128x512xf32>
    %70 = arith.maximumf %68, %69 : vector<128x512xf32>
    %cst_32 = arith.constant 0.000000e+00 : f32
    %71 = vector.shape_cast %41 : vector<128x1xi1> to vector<128x1xi1>
    %72 = vector.broadcast %71 : vector<128x1xi1> to vector<128x512xi1>
    %73 = vector.broadcast %cst_32 : f32 to vector<128x512xf32>
    %74 = arith.select %72, %70, %73 : vector<128x512xi1>, vector<128x512xf32>
    %cst_33 = arith.constant dense<0xFF800000> : vector<512xf32>
    %75 = vector.multi_reduction <maximumf>, %74, %cst_33 [0] : vector<128x512xf32> to vector<512xf32>
    %76 = vector.shape_cast %75 : vector<512xf32> to vector<1x512xf32>
    %c0_34 = arith.constant 0 : index
    %c0_35 = arith.constant 0 : index
    %c512_36 = arith.constant 512 : index
    %77 = vector.load %arg10[%c0_34, %c0_35, %c512_36] : memref<1x1x1024xf32, #tpu.memory_space<vmem>>, vector<1x1x512xf32>
    %78 = vector.shape_cast %77 : vector<1x1x512xf32> to vector<1x512xf32>
    %79 = arith.maximumf %78, %76 : vector<1x512xf32>
    %c0_37 = arith.constant 0 : index
    %c0_38 = arith.constant 0 : index
    %c512_39 = arith.constant 512 : index
    %80 = vector.load %arg10[%c0_37, %c0_38, %c512_39] : memref<1x1x1024xf32, #tpu.memory_space<vmem>>, vector<1x1x512xf32>
    %81 = vector.shape_cast %80 : vector<1x1x512xf32> to vector<1x512xf32>
    %82 = vector.shape_cast %79 : vector<1x512xf32> to vector<1x1x512xf32>
    tpu.vector_store %arg10[%c0_37, %c0_38, %c512_39], %82 {strides = array<i32>} : memref<1x1x1024xf32, #tpu.memory_space<vmem>>, vector<1x1x512xf32>,
    return
  }
  func.func @transform_0(%arg0: i32, %arg1: i32, %arg2: i32) -> (i32, i32, i32) {
    %c3_i32 = arith.constant 3 : i32
    %0 = arith.muli %arg1, %c3_i32 : i32
    %1 = arith.addi %0, %arg2 : i32
    %c0_i32 = arith.constant 0 : i32
    %c0_i32_0 = arith.constant 0 : i32
    return %arg0, %c0_i32, %1 : i32, i32, i32
  }
  func.func @transform_1(%arg0: i32, %arg1: i32, %arg2: i32) -> (i32, i32) {
    %c0_i32 = arith.constant 0 : i32
    %c0_i32_0 = arith.constant 0 : i32
    %c0_i32_1 = arith.constant 0 : i32
    return %c0_i32, %c0_i32_0 : i32, i32
  }
  func.func @transform_2(%arg0: i32, %arg1: i32, %arg2: i32) -> (i32, i32) {
    %c0_i32 = arith.constant 0 : i32
    %c0_i32_0 = arith.constant 0 : i32
    %c0_i32_1 = arith.constant 0 : i32
    return %c0_i32, %c0_i32_0 : i32, i32
  }
  func.func @transform_3(%arg0: i32, %arg1: i32, %arg2: i32) -> (i32, i32) {
    %c0_i32 = arith.constant 0 : i32
    %c0_i32_0 = arith.constant 0 : i32
    %c0_i32_1 = arith.constant 0 : i32
    return %c0_i32, %c0_i32_0 : i32, i32
  }
  func.func @transform_4(%arg0: i32, %arg1: i32, %arg2: i32) -> (i32, i32) {
    %c0_i32 = arith.constant 0 : i32
    %c0_i32_0 = arith.constant 0 : i32
    %c0_i32_1 = arith.constant 0 : i32
    return %c0_i32, %c0_i32_0 : i32, i32
  }
  func.func @transform_5(%arg0: i32, %arg1: i32, %arg2: i32) -> (i32, i32) {
    %c0_i32 = arith.constant 0 : i32
    %c0_i32_0 = arith.constant 0 : i32
    %c0_i32_1 = arith.constant 0 : i32
    return %c0_i32, %c0_i32_0 : i32, i32
  }
  func.func @transform_6(%arg0: i32, %arg1: i32, %arg2: i32) -> (i32, i32) {
    %c0_i32 = arith.constant 0 : i32
    %c0_i32_0 = arith.constant 0 : i32
    %c0_i32_1 = arith.constant 0 : i32
    return %c0_i32, %c0_i32_0 : i32, i32
  }
  func.func @transform_7(%arg0: i32, %arg1: i32, %arg2: i32) -> (i32, i32, i32) {
    %c0_i32 = arith.constant 0 : i32
    %c0_i32_0 = arith.constant 0 : i32
    return %arg0, %arg1, %c0_i32 : i32, i32, i32
  }
}

</mosaic_0001>

<bundles_post_ra>
// kernel: tpu_custom_call.1
= control target key start
LH: loop header
LB: loop body
LE: loop exit
PB: predicated region body
PF: predicated region fallthrough
CT: control target
= control target key end

     0   :  { %s3748_s0 = inlined_call_operand.vmem [shape: f32[2,3,384], index: 0, kind: input, shape index: {}]   ;;  %s3749_s1 = inlined_call_operand.vmem [shape: f32[64,3], index: 1, kind: input, shape index: {}]   ;;  %s3750_s2 = inlined_call_operand.vmem [shape: f32[64,1], index: 2, kind: input, shape index: {}]   ;;  %s3751_s3 = inlined_call_operand.vmem [shape: bf16[64,128], index: 3, kind: input, shape index: {}]   ;;  %s3752_s4 = inlined_call_operand.vmem [shape: f32[1,128], index: 4, kind: input, shape index: {}]   ;;  %s3753_s5 = inlined_call_operand.hbm [shape: bf16[128,1024], index: 5, kind: input, shape index: {}]   ;;  %s3754_s6 = inlined_call_operand.vmem [shape: f32[1,1024], index: 6, kind: input, shape index: {}]   ;;  %s3755_s7 = inlined_call_operand.hbm [shape: f32[2,1,1024], index: 7, kind: output, shape index: {}]  }
   0x1   :  { %3757 = sst [smem:[#allocation8_spill]] %s3748_s0 }
   0x2   :  { %12 = vsyncpa [#allocation3], 0 }
   0x3   :  { %13 = vsyncpa [#allocation4], 0 }
   0x4   :  { %15 = vsyncpa [#allocation4 + $0x1], 0  ;;  %s2785_s24 = smov 0   ;;  %s2787_s25 = smov 0  }
   0x5   :  { %s2789_s26 = smov 0   ;;  %s2791_s27 = smov 0  }
   0x6   :  { %s2793_s28 = smov 0   ;;  %s2795_s29 = smov 0  }
   0x7   :  { %s2797_s30 = smov 0   ;;  %s2799_s8 = smov 0  }
   0x8 LB: > { %s2351_s9 = sadd.s32 4294967295, %s2734_s8   ;;  %s2352_s10 = sadd.s32 4294967294, %s2734_s8   ;;  %s2734_s8 = sphi %s2799_s8, %s21_s8   ;;  %s2730_s30 = sphi %s2797_s30, %s3805_s30   ;;  %s2726_s29 = sphi %s2795_s29, %s3804_s29   ;;  %s2722_s28 = sphi %s2793_s28, %s3803_s28   ;;  %s2718_s27 = sphi %s2791_s27, %s3802_s27   ;;  %s2714_s26 = sphi %s2789_s26, %s3801_s26   ;;  %s2710_s25 = sphi %s2787_s25, %s3800_s25   ;;  %s2706_s24 = sphi %s2785_s24, %s3799_s24  }
   0x9   : > { %s33_s11 = sadd.s32 1, %s2726_s29  ;;  %s40_s12 = sadd.s32 1, %s2730_s30 }
   0xa   : > { %p34_p0 = scmp.ge.s32.totalorder %s33_s11, 3  ;;  %s207_s13 = sadd.s32 1, %s2714_s26 }
   0xb   : > { %p217_p1 = scmp.ne.s32.totalorder %s2714_s26, %s2710_s25  ;;  %p218_p2 = scmp.eq.s32.totalorder %s2351_s9, 5 }
   0xc   : > { %s3807_s11 = smov (%p34_p0, %s33_s11), 0  ;;  %s3809_s12 = smov (!%p34_p0, %s40_s12), %s2730_s30 }
   0xd   : > { %p2835_p3 = por %p218_p2, %p217_p1  ;;  %p223_p4 = scmp.ne.s32.totalorder %s2710_s25, %s2706_s24 }
   0xe   : > { %p42_p5 = scmp.ge.s32.totalorder %s3809_s12, 2  ;;  %p224_p6 = scmp.eq.s32.totalorder %s2352_s10, 5 }
   0xf   : > { %p2353_p7 = scmp.ge.s32.totalorder %s2734_s8, 1  ;;  %p231_p8 = scmp.lt.s32.totalorder %s2734_s8, 7 }
  0x10   : > { %s3811_s12 = smov (%p42_p5, %s3809_s12), 0  ;;  %p2845_p9 = por %p224_p6, %p223_p4 }
  0x11   : > { %p2849_p10 = pnand %p2353_p7, %p231_p8  ;;  %s202_s17 = ssub.s32 %s2730_s30, %s3811_s12 }
  0x12   : > { %p205_p11 = scmp.eq.s32.totalorder %s202_s17, 0  ;;  %p2857_p13 = scmp.eq.s32.totalorder %s2351_s9, 0 }
  0x13   : > { %p2504_p12 = pneg %p2849_p10  ;;  %s2736_s20 = smov [#allocation2]  }
  0x14   : > { %s2862_s19 = scalar_select %p205_p11, %s2714_s26, %s207_s13  }
  0x15   : > { %s255_s21 = sshll.u32 %s2736_s20, 4  ;;  %p2866_p0 = pnand %p2857_p13, %p2504_p12  ;;  %s256_s21 = int_to_ptr.vmem [resolvable:$true] %s255_s21 }
  0x16   : > { %s2623_s23 = scalar_lea.vmem %s256_s21, 8192  ;;  %p2631_p6 = scmp.lt.s32.totalorder %s256_s21, %s256_s21 }
  0x17   : > { %p2614_p1 = pneg %p2866_p0  ;;  %p2624_p2 = scmp.ne.s32.totalorder %s256_s21, %s2623_s23 }
  0x18   : > { %p2632_p7 = scmp.lt.s32.totalorder %s2623_s23, %s2623_s23 }
  0x19   : > { %p2626_p4 = pnand %p2624_p2, %p2614_p1 }
  0x1a   : > { %p2633_p8 = por %p2632_p7, %p2631_p6 }
  0x1b   : > { %p2627_p5 = pneg %p2626_p4 }
  0x1d   : > { %p2634_p11 = pnand %p2633_p8, %p2627_p5 }
  0x1f   : > { %2637 = shalt.err (!%p2634_p11)
}
  0x20   : > { %s2737_s9 = smov 512   ;;  %s2738_s10 = smov 32  }
  0x21   : > { %2507 = dma.hbm_to_vmem [thread:$0]  (!%p2866_p0), %s3753_s5, 8192, %s256_s21, [#allocation3], %s2737_s9, %s2737_s9, %s2738_s10  }
  0x22   : > { %289 = sbr.rel (%p2849_p10) target bundleno = 1033 (0x409), region = 48 }
  0x27   : > { %2697 = dma.done.wait (%p2857_p13), [#allocation3], 8192  }
  0x28   : > { %2699 = vsyncadd (%p2857_p13), [#allocation3], 4294959104  ;;  %v388_v0 = vlaneseq  ;;  %v2739_v1 = vmov 2   ;;  %v2740_v2 = vmov 0   ;;  %s2373_s20 = sshll.u32 %s2718_s27, 7  ;;  %v342_v14 = vld [vmem:[%s3749_s1 + $0x10] sm:$0xff] }
  0x29   : > { %2594 = vset.pattern.permute.xlu0 %v2739_v1  ;;  %2588 = vset.pattern.permute.xlu1 %v2740_v2  ;;  %s813_s16 = ssub.s32 300, %s2373_s20  ;;  %v341_v15 = vld [vmem:[%s3749_s1 + $0x8] sm:$0xff]  ;;  %v340_v28 = vld [vmem:[%s3749_s1] sm:$0xff]  ;;  %v2741_v37 = vmov 1   ;;  %v3793_v40 = vmov 0  ;;  %v346_v41 = vld [vmem:[%s3749_s1 + $0x30] sm:$0xff] }
  0x2a   : > { %v2887_v3 = vshrl.u32 %v388_v0, 7  ;;  %v814_v19 = vstv %s813_s16  ;;  %461 = vperm.xlu0 %2594, %v342_v14   ;;  %355 = vperm.xlu1 %2588, %v341_v15   ;;  %v344_v38 = vld [vmem:[%s3749_s1 + $0x20] sm:$0xff]  ;;  %v343_v42 = vld [vmem:[%s3749_s1 + $0x18] sm:$0xff]  ;;  %v345_v43 = vld [vmem:[%s3749_s1 + $0x28] sm:$0xff]  ;;  %s323_s22 = sand.u32 1, %s2710_s25   ;;  %p328_p10 = scmp.lt.s32.totalorder %s2722_s28, 1 }
  0x2b   : > { %v504_v44 = vld [vmem:[%s3750_s2] sm:$0xff]  ;;  %v506_v45 = vld [vmem:[%s3750_s2 + $0x10] sm:$0xff]  ;;  %v347_v46 = vld [vmem:[%s3749_s1 + $0x38] sm:$0xff]  ;;  %s3035_s10 = sshll.u32 %s323_s22, 3  ;;  %p330_p12 = scmp.lt.s32.totalorder %s2718_s27, 2 }
  0x2c   : > { %v798_v4 = vadd.s32 8, %v2887_v3  ;;  %v799_v5 = vadd.s32 16, %v2887_v3  ;;  %v800_v6 = vadd.s32 24, %v2887_v3  ;;  %v801_v7 = vadd.s32 32, %v2887_v3  ;;  %v508_v47 = vld [vmem:[%s3750_s2 + $0x20] sm:$0xff]  ;;  %v505_v48 = vld [vmem:[%s3750_s2 + $0x8] sm:$0xff] }
  0x2d   : > { %v802_v8 = vadd.s32 40, %v2887_v3  ;;  %v803_v9 = vadd.s32 48, %v2887_v3  ;;  %v804_v10 = vadd.s32 56, %v2887_v3  ;;  %v805_v11 = vadd.s32 64, %v2887_v3  ;;  %v509_v49 = vld [vmem:[%s3750_s2 + $0x28] sm:$0xff]  ;;  %v511_v50 = vld [vmem:[%s3750_s2 + $0x38] sm:$0xff] }
  0x2e   : > { %v806_v12 = vadd.s32 72, %v2887_v3  ;;  %v807_v13 = vadd.s32 80, %v2887_v3  ;;  %v808_v16 = vadd.s32 88, %v2887_v3  ;;  %v809_v17 = vadd.s32 96, %v2887_v3  ;;  %2595 = vset.pattern.permute.xlu0 %v2741_v37  ;;  %2589 = vset.pattern.permute.xlu1 %v2741_v37  ;;  %v507_v51 = vld [vmem:[%s3750_s2 + $0x18] sm:$0xff]  ;;  %v510_v52 = vld [vmem:[%s3750_s2 + $0x30] sm:$0xff] }
  0x2f   : > { %v810_v18 = vadd.s32 104, %v2887_v3  ;;  %v811_v20 = vadd.s32 112, %v2887_v3  ;;  %v812_v21 = vadd.s32 120, %v2887_v3  ;;  %vm2911_vm0 = vcmp.lt.s32.totalorder %v2887_v3, %v814_v19  ;;  %405 = vperm.xlu1 %2589, %v341_v15   ;;  %401 = vperm.xlu0 %2595, %v340_v28   ;;  %v2608_v53 = vld [vmem:[%s3751_s3 + $0x18] sm:$0xff]   ;;  %s329_s13 = scalar_select %p328_p10, %s2722_s28, 1 }
  0x30   : > { %vm2915_vm1 = vcmp.lt.s32.totalorder %v798_v4, %v814_v19  ;;  %vm2919_vm2 = vcmp.lt.s32.totalorder %v799_v5, %v814_v19  ;;  %vm2923_vm3 = vcmp.lt.s32.totalorder %v800_v6, %v814_v19  ;;  %vm2927_vm4 = vcmp.lt.s32.totalorder %v801_v7, %v814_v19  ;;  %2457 = vmatprep.subr.bf16.mxu0 %v2608_v53  ;;  %s331_s17 = scalar_select %p330_p12, %s2718_s27, 2 }
  0x31   : > { %vm2931_vm5 = vcmp.lt.s32.totalorder %v802_v8, %v814_v19  ;;  %vm2938_vm6 = vcmp.lt.s32.totalorder %v803_v9, %v814_v19  ;;  %vm2942_vm7 = vcmp.lt.s32.totalorder %v804_v10, %v814_v19  ;;  %vm2946_vm8 = vcmp.lt.s32.totalorder %v805_v11, %v814_v19  ;;  %2458 = vmatpush3.bf16.msra.mxu0 %v2608_v53  ;;  %s2497_s20 = smul.u32 3, %s329_s13  ;;  %s3795_s0 = sld [smem:[#allocation8_spill]] }
  0x32   : > { %vm2950_vm9 = vcmp.lt.s32.totalorder %v806_v12, %v814_v19  ;;  %vm2954_vm10 = vcmp.lt.s32.totalorder %v807_v13, %v814_v19  ;;  %vm2958_vm11 = vcmp.lt.s32.totalorder %v808_v16, %v814_v19  ;;  %vm2962_vm12 = vcmp.lt.s32.totalorder %v809_v17, %v814_v19  ;;  %s3126_s13 = scalar_lea.vmem [#allocation5], %s3035_s10  ;;  %p2374_p13 = scmp.ne.s32.totalorder %s2718_s27, 0 }
  0x33   : > { %vm2966_vm13 = vcmp.lt.s32.totalorder %v810_v18, %v814_v19  ;;  %vm2973_vm14 = vcmp.lt.s32.totalorder %v811_v20, %v814_v19  ;;  %vm2977_vm15 = vcmp.lt.s32.totalorder %v812_v21, %v814_v19  ;;  %2590 = vset.pattern.permute.xlu1 %v2739_v1  ;;  %417 = vperm.xlu0 %2595, %v344_v38   ;;  %s333_s16 = sadd.s32 %s2497_s20, %s331_s17  ;;  %v3047_v61 = vsub.s32 0, %v2887_v3 }
  0x34   : > { %v3794_v40 = vsel %vm2977_vm15, 4294967295, %v3793_v40  ;;  %453 = vperm.xlu1 %2590, %v340_v28   ;;  %s2359_s18 = sshll.u32 %s333_s16, 2  ;;  %v3050_v62 = vsub.s32 1, %v2887_v3  ;;  %v3056_v6 = vsub.s32 2, %v2887_v3  ;;  %vm647_vm15 = vcmask 523264  }
  0x37   : > { %425 = vperm.xlu0 %2595, %v346_v41   ;;  %s335_s9 = scalar_lea.vmem %s3795_s0, %s2359_s18 }
  0x38   : > { %2591 = vset.pattern.permute.xlu1 %v2741_v37 }
  0x39   : > { %409 = vperm.xlu1 %2591, %v342_v14  }
  0x3b   : > { %2602 = vset.pattern.permute.xlu0 %v2740_v2 }
  0x3c   : > { %350 = vperm.xlu0 %2602, %v340_v28  }
  0x3d   : > { %2592 = vset.pattern.permute.xlu1 %v2739_v1 }
  0x3e   : > { %457 = vperm.xlu1 %2592, %v341_v15  }
  0x40   : > { %360 = vperm.xlu0 %2602, %v342_v14  }
  0x42   : > { %2593 = vset.pattern.permute.xlu1 %v2741_v37 }
  0x43   : > { %413 = vperm.xlu1 %2593, %v343_v42  }
  0x44   : > { %365 = vperm.xlu0 %2602, %v343_v42  }
  0x47   : > { %2596 = vset.pattern.permute.xlu1 %v2740_v2 }
  0x48   : > { %375 = vperm.xlu0 %2602, %v345_v43   ;;  %514 = vperm.xlu1 %2596, %v504_v44  }
  0x4c   : > { %524 = vperm.xlu0 %2602, %v506_v45   ;;  %370 = vperm.xlu1 %2596, %v344_v38  }
  0x50   : > { %2597 = vset.pattern.permute.xlu1 %v2739_v1  ;;  %385 = vperm.xlu0 %2602, %v347_v46  }
  0x51   : > { %465 = vperm.xlu1 %2597, %v343_v42  }
  0x54   : > { %534 = vperm.xlu0 %2602, %v508_v47  }
  0x55   : > { %2598 = vset.pattern.permute.xlu1 %v2740_v2 }
  0x56   : > { %519 = vperm.xlu1 %2598, %v505_v48  }
  0x58   : > { %539 = vperm.xlu0 %2602, %v509_v49  }
  0x5a   : > { %2599 = vset.pattern.permute.xlu1 %v2741_v37 }
  0x5b   : > { %421 = vperm.xlu1 %2599, %v345_v43  }
  0x5c   : > { %549 = vperm.xlu0 %2602, %v511_v50  }
  0x5f   : > { %2600 = vset.pattern.permute.xlu1 %v2739_v1 }
  0x60   : > { %469 = vperm.xlu1 %2600, %v344_v38  }
  0x64   : > { %2601 = vset.pattern.permute.xlu1 %v2740_v2 }
  0x65   : > { %380 = vperm.xlu1 %2601, %v346_v41  }
  0x69   : > { %2603 = vset.pattern.permute.xlu1 %v2739_v1 }
  0x6a   : > { %473 = vperm.xlu1 %2603, %v345_v43  }
  0x6e   : > { %2604 = vset.pattern.permute.xlu1 %v2740_v2 }
  0x6f   : > { %529 = vperm.xlu1 %2604, %v507_v51  }
  0x73   : > { %2605 = vset.pattern.permute.xlu1 %v2741_v37 }
  0x74   : > { %429 = vperm.xlu1 %2605, %v347_v46  }
  0x78   : > { %2606 = vset.pattern.permute.xlu1 %v2739_v1  ;;  %v339_v1 = vld [vmem:[%s335_s9] sm:$0x7] }
  0x79   : > { %477 = vperm.xlu1 %2606, %v346_v41   ;;  %v3053_v5 = vrot.slane %v339_v1, %v3047_v61  ;;  %v3059_v7 = vrot.slane %v339_v1, %v3050_v62  ;;  %v3064_v11 = vrot.slane %v339_v1, %v3056_v6 }
  0x7d   : > { %481 = vperm.xlu1 %2606, %v347_v46  }
  0x81   : > { %2607 = vset.pattern.permute.xlu1 %v2740_v2 }
  0x82   : > { %544 = vperm.xlu1 %2607, %v510_v52  }
  0xa5   : > { %v356_v54 = vpop.permute.xlu1 %355  ;;  %v462_v55 = vpop.permute.xlu0 %461 }
  0xa6   : > { %v393_v41 = vmul.f32 %v3053_v5, %v356_v54  ;;  %v490_v45 = vmul.f32 %v3064_v11, %v462_v55 }
  0xaa   : > { %v406_v56 = vpop.permute.xlu1 %405  ;;  %v402_v57 = vpop.permute.xlu0 %401 }
  0xab   : > { %v436_v9 = vmul.f32 %v3059_v7, %v402_v57  ;;  %v437_v28 = vmul.f32 %v3059_v7, %v406_v56 }
  0xad   : > { %v445_v46 = vadd.f32 %v437_v28, %v393_v41 }
  0xae   : > { %v418_v58 = vpop.permute.xlu0 %417 }
  0xaf   : > { %v454_v59 = vpop.permute.xlu1 %453  ;;  %v440_v1 = vmul.f32 %v3059_v7, %v418_v58 }
  0xb0   : > { %v488_v15 = vmul.f32 %v3064_v11, %v454_v59 }
  0xb2   : > { %v3044_v60 = vpop.permute.xlu0 %425 }
  0xb4   : > { %v410_v63 = vpop.permute.xlu1 %409 }
  0xb5   : > { %v438_v42 = vmul.f32 %v3059_v7, %v410_v63 }
  0xb7   : > { %v351_v4 = vpop.permute.xlu0 %350 }
  0xb8   : > { %v392_v10 = vmul.f32 %v3053_v5, %v351_v4 }
  0xb9   : > { %v458_v8 = vpop.permute.xlu1 %457 }
  0xba   : > { %v444_v12 = vadd.f32 %v436_v9, %v392_v10  ;;  %v489_v43 = vmul.f32 %v3064_v11, %v458_v8 }
  0xbb   : > { %v361_v14 = vpop.permute.xlu0 %360 }
  0xbc   : > { %v496_v16 = vadd.f32 %v488_v15, %v444_v12  ;;  %v394_v37 = vmul.f32 %v3053_v5, %v361_v14  ;;  %v497_v48 = vadd.f32 %v489_v43, %v445_v46  ;;  %v2609_v15 = vld [vmem:[%s3751_s3 + $0x10] sm:$0xff]  }
  0xbd   : > { %2459 = vmatprep.subr.bf16.mxu0 %v2609_v15 }
  0xbe   : > { %v414_v13 = vpop.permute.xlu1 %413  ;;  %v446_v47 = vadd.f32 %v438_v42, %v394_v37  ;;  %2460 = vmatpush3.bf16.msra.mxu0 %v2609_v15  ;;  %v2610_v42 = vld [vmem:[%s3751_s3 + $0x8] sm:$0xff]  }
  0xbf   : > { %v366_v19 = vpop.permute.xlu0 %365  ;;  %v439_v4 = vmul.f32 %v3059_v7, %v414_v13  ;;  %2461 = vmatprep.subr.bf16.mxu0 %v2610_v42 }
  0xc0   : > { %v498_v51 = vadd.f32 %v490_v45, %v446_v47  ;;  %v395_v55 = vmul.f32 %v3053_v5, %v366_v19  ;;  %v2611_v45 = vld [vmem:[%s3751_s3] sm:$0xff]  }
  0xc2   : > { %2462 = vmatpush3.bf16.msra.mxu0 %v2610_v42 }
  0xc3   : > { %v515_v17 = vpop.permute.xlu1 %514  ;;  %v376_v38 = vpop.permute.xlu0 %375  ;;  %2463 = vmatprep.subr.bf16.mxu0 %v2611_v45 }
  0xc4   : > { %v552_v18 = vadd.f32 %v515_v17, %v496_v16  ;;  %v447_v16 = vadd.f32 %v439_v4, %v395_v55  ;;  %v397_v17 = vmul.f32 %v3053_v5, %v376_v38 }
  0xc6   : > { %v560_v20 = vmax.f32 %v552_v18, 0.0  ;;  %2464 = vmatpush3.bf16.msra.mxu0 %v2611_v45 }
  0xc7   : > { %v371_v21 = vpop.permute.xlu1 %370  ;;  %v525_v49 = vpop.permute.xlu0 %524 }
  0xc8   : > { %568 = vxpose.xlu1.b32.start [1/8] (short) %v560_v20, 128  ;;  %v554_v53 = vadd.f32 %v525_v49, %v498_v51  ;;  %v396_v8 = vmul.f32 %v3053_v5, %v371_v21 }
  0xca   : > { %v562_v59 = vmax.f32 %v554_v53, 0.0  ;;  %v448_v58 = vadd.f32 %v440_v1, %v396_v8 }
  0xcb   : > { %v386_v9 = vpop.permute.xlu0 %385 }
  0xcc   : > { %v466_v44 = vpop.permute.xlu1 %465 }
  0xcd   : > { %v491_v10 = vmul.f32 %v3064_v11, %v466_v44 }
  0xcf   : > { %v499_v20 = vadd.f32 %v491_v10, %v447_v16  ;;  %v535_v21 = vpop.permute.xlu0 %534 }
  0xd1   : > { %v520_v50 = vpop.permute.xlu1 %519 }
  0xd2   : > { %v553_v52 = vadd.f32 %v520_v50, %v497_v48 }
  0xd3   : > { %v540_v47 = vpop.permute.xlu0 %539 }
  0xd4   : > { %v561_v56 = vmax.f32 %v553_v52, 0.0 }
  0xd6   : > { %v422_v57 = vpop.permute.xlu1 %421  ;;  %569 = vxpose.xlu1.b32.cont [2/8] (short) %v561_v56, 128  ;;  %v442_v56 = vmul.f32 %v3059_v7, %v3044_v60 }
  0xd7   : > { %v441_v13 = vmul.f32 %v3059_v7, %v422_v57  ;;  %v399_v57 = vmul.f32 %v3053_v5, %v386_v9 }
  0xd9   : > { %v449_v37 = vadd.f32 %v441_v13, %v397_v17 }
  0xda   : > { %570 = vxpose.xlu1.b32.cont [3/8] (short) %v562_v59, 128 }
  0xdb   : > { %v470_v54 = vpop.permute.xlu1 %469 }
  0xdc   : > { %v492_v12 = vmul.f32 %v3064_v11, %v470_v54 }
  0xde   : > { %v500_v18 = vadd.f32 %v492_v12, %v448_v58 }
  0xe0   : > { %v381_v63 = vpop.permute.xlu1 %380  ;;  %v556_v43 = vadd.f32 %v535_v21, %v500_v18 }
  0xe1   : > { %v398_v52 = vmul.f32 %v3053_v5, %v381_v63  ;;  %v550_v63 = vpop.permute.xlu0 %549 }
  0xe2   : > { %v564_v48 = vmax.f32 %v556_v43, 0.0 }
  0xe3   : > { %v450_v4 = vadd.f32 %v442_v56, %v398_v52  ;;  %v2360_v52 = vld [vmem:[%s3752_s4] ss:$0 sm:$0xff] }
  0xe5   : > { %v474_v14 = vpop.permute.xlu1 %473 }
  0xe6   : > { %v493_v19 = vmul.f32 %v3064_v11, %v474_v14 }
  0xe8   : > { %v501_v44 = vadd.f32 %v493_v19, %v449_v37 }
  0xea   : > { %v530_v28 = vpop.permute.xlu1 %529  ;;  %v557_v49 = vadd.f32 %v540_v47, %v501_v44 }
  0xeb   : > { %v555_v41 = vadd.f32 %v530_v28, %v499_v20 }
  0xec   : > { %v565_v51 = vmax.f32 %v557_v49, 0.0 }
  0xed   : > { %v563_v38 = vmax.f32 %v555_v41, 0.0 }
  0xef   : > { %v430_v46 = vpop.permute.xlu1 %429  ;;  %571 = vxpose.xlu1.b32.cont [4/8] (short) %v563_v38, 128 }
  0xf0   : > { %v443_v53 = vmul.f32 %v3059_v7, %v430_v46 }
  0xf2   : > { %v451_v55 = vadd.f32 %v443_v53, %v399_v57 }
  0xf3   : > { %572 = vxpose.xlu1.b32.cont [5/8] (short) %v564_v48, 128 }
  0xf4   : > { %v478_v50 = vpop.permute.xlu1 %477 }
  0xf5   : > { %v494_v59 = vmul.f32 %v3064_v11, %v478_v50 }
  0xf7   : > { %573 = vxpose.xlu1.b32.cont [6/8] (short) %v565_v51, 128  ;;  %v502_v10 = vadd.f32 %v494_v59, %v450_v4 }
  0xf8   : > { %v482_v54 = vpop.permute.xlu1 %481 }
  0xf9   : > { %v495_v1 = vmul.f32 %v3064_v11, %v482_v54 }
  0xfb   : > { %v503_v8 = vadd.f32 %v495_v1, %v451_v55 }
  0xfd   : > { %v545_v12 = vpop.permute.xlu1 %544  ;;  %v559_v15 = vadd.f32 %v550_v63, %v503_v8 }
  0xfe   : > { %v558_v14 = vadd.f32 %v545_v12, %v502_v10 }
  0xff   : > { %v567_v17 = vmax.f32 %v559_v15, 0.0 }
 0x100   : > { %v566_v16 = vmax.f32 %v558_v14, 0.0 }
 0x102   : > { %574 = vxpose.xlu1.b32.cont [7/8] (short) %v566_v16, 128 }
 0x106   : > { %575 = vxpose.xlu1.b32.end [8/8] (short) %v567_v17, 128 }
 0x166   : > { %v584_v60 = vpop.trf.xlu1 }
 0x16a   : > { %v585_v7 = vpop.trf.xlu1 }
 0x16b   : > { %v600_v5 = vpack.c.bf16 %v585_v7, %v584_v60 }
 0x16d   : > { %2465 = vmatprep.mubr.msk.bf16.mxu0 %vm647_vm15, %v600_v5 }
 0x16e   : > { %v586_v9 = vpop.trf.xlu1 }
 0x172   : > { %v587_v11 = vpop.trf.xlu1 }
 0x173   : > { %v601_v58 = vpack.c.bf16 %v587_v11, %v586_v9 }
 0x175   : > { %2466 = vmatmul.mubr.msk.bf16.vlgmr.msra.gmra.mxu0 %vm647_vm15, %v601_v58 }
 0x176   : > { %v588_v13 = vpop.trf.xlu1 }
 0x17a   : > { %v589_v18 = vpop.trf.xlu1 }
 0x17b   : > { %v602_v19 = vpack.c.bf16 %v589_v18, %v588_v13 }
 0x17d   : > { %2469 = vmatprep.mubr.msk.bf16.mxu0 %vm647_vm15, %v602_v19 }
 0x17e   : > { %v590_v20 = vpop.trf.xlu1 }
 0x182   : > { %v591_v21 = vpop.trf.xlu1 }
 0x183   : > { %v603_v28 = vpack.c.bf16 %v591_v21, %v590_v20 }
 0x185   : > { %2470 = vmatmul.mubr.msk.bf16.gmra.mxu0 %vm647_vm15, %v603_v28 }
 0x186   : > { %v592_v37 = vpop.trf.xlu1 }
 0x18a   : > { %v593_v41 = vpop.trf.xlu1 }
 0x18b   : > { %v604_v42 = vpack.c.bf16 %v593_v41, %v592_v37 }
 0x18d   : > { %2473 = vmatprep.mubr.msk.bf16.mxu0 %vm647_vm15, %v604_v42 }
 0x18e   : > { %v594_v43 = vpop.trf.xlu1 }
 0x192   : > { %v595_v44 = vpop.trf.xlu1 }
 0x193   : > { %v605_v38 = vpack.c.bf16 %v595_v44, %v594_v43 }
 0x195   : > { %2474 = vmatmul.mubr.msk.bf16.gmra.mxu0 %vm647_vm15, %v605_v38 }
 0x196   : > { %v596_v45 = vpop.trf.xlu1 }
 0x19a   : > { %v597_v46 = vpop.trf.xlu1 }
 0x19b   : > { %v606_v47 = vpack.c.bf16 %v597_v46, %v596_v45 }
 0x19d   : > { %2477 = vmatprep.mubr.msk.bf16.mxu0 %vm647_vm15, %v606_v47 }
 0x19e   : > { %v598_v48 = vpop.trf.xlu1 }
 0x1a2   : > { %v599_v49 = vpop.trf.xlu1 }
 0x1a3   : > { %v607_v50 = vpack.c.bf16 %v599_v49, %v598_v48 }
 0x1a5   : > { %2478 = vmatmul.mubr.msk.bf16.gmra.mxu0 %vm647_vm15, %v607_v50 }
 0x235   : > { %v2467_v51 = vpop.f32.mrf.mxu0 }
 0x236   : > { %v715_v56 = vadd.f32 %v2467_v51, %v2360_v52 }
 0x237   : > { %v706_v53 = vpop.f32.mrf.mxu0 }
 0x238   : > { %v707_v59 = vadd.f32 %v2360_v52, %v706_v53  ;;  %v771_v4 = vmax.f32 %v715_v56, 0.0 }
 0x239   : > { %v2468_v57 = vpop.f32.mrf.mxu0 }
 0x23a   : > { %v718_v54 = vadd.f32 %v2468_v57, %v2360_v52  ;;  %v769_v10 = vmax.f32 %v707_v59, 0.0 }
 0x23b   : > { %v709_v1 = vpop.f32.mrf.mxu0 }
 0x23c   : > { %v772_v55 = vmax.f32 %v718_v54, 0.0  ;;  %v710_v8 = vadd.f32 %v2360_v52, %v709_v1 }
 0x23e   : > { %v3109_v12 = vpack.c.bf16 %v772_v55, %v771_v4  ;;  %v770_v14 = vmax.f32 %v710_v8, 0.0 }
 0x240   : > { %v3111_v63 = vpack.c.bf16 %v770_v14, %v769_v10 }
 0x245   : > { %v2471_v15 = vpop.f32.mrf.mxu0 }
 0x246   : > { %v731_v17 = vadd.f32 %v2471_v15, %v2360_v52 }
 0x247   : > { %v722_v16 = vpop.f32.mrf.mxu0 }
 0x248   : > { %v723_v7 = vadd.f32 %v2360_v52, %v722_v16  ;;  %v775_v11 = vmax.f32 %v731_v17, 0.0 }
 0x249   : > { %v2472_v60 = vpop.f32.mrf.mxu0 }
 0x24a   : > { %v734_v5 = vadd.f32 %v2472_v60, %v2360_v52  ;;  %v773_v18 = vmax.f32 %v723_v7, 0.0 }
 0x24b   : > { %v725_v9 = vpop.f32.mrf.mxu0 }
 0x24c   : > { %v776_v58 = vmax.f32 %v734_v5, 0.0  ;;  %v726_v13 = vadd.f32 %v2360_v52, %v725_v9 }
 0x24e   : > { %v3113_v19 = vpack.c.bf16 %v776_v58, %v775_v11  ;;  %v774_v20 = vmax.f32 %v726_v13, 0.0 }
 0x250   : > { %v3115_v21 = vpack.c.bf16 %v774_v20, %v773_v18 }
 0x255   : > { %v2475_v28 = vpop.f32.mrf.mxu0 }
 0x256   : > { %v747_v41 = vadd.f32 %v2475_v28, %v2360_v52 }
 0x257   : > { %v738_v37 = vpop.f32.mrf.mxu0 }
 0x258   : > { %v739_v43 = vadd.f32 %v2360_v52, %v738_v37  ;;  %v779_v45 = vmax.f32 %v747_v41, 0.0 }
 0x259   : > { %v2476_v42 = vpop.f32.mrf.mxu0 }
 0x25a   : > { %v750_v44 = vadd.f32 %v2476_v42, %v2360_v52  ;;  %v777_v48 = vmax.f32 %v739_v43, 0.0 }
 0x25b   : > { %v741_v38 = vpop.f32.mrf.mxu0 }
 0x25c   : > { %v780_v46 = vmax.f32 %v750_v44, 0.0  ;;  %v742_v47 = vadd.f32 %v2360_v52, %v741_v38 }
 0x25e   : > { %v3117_v49 = vpack.c.bf16 %v780_v46, %v779_v45  ;;  %v778_v50 = vmax.f32 %v742_v47, 0.0 }
 0x260   : > { %v3119_v51 = vpack.c.bf16 %v778_v50, %v777_v48 }
 0x265   : > { %v2479_v53 = vpop.f32.mrf.mxu0 }
 0x266   : > { %v763_v57 = vadd.f32 %v2479_v53, %v2360_v52 }
 0x267   : > { %v754_v56 = vpop.f32.mrf.mxu0 }
 0x268   : > { %v755_v54 = vadd.f32 %v2360_v52, %v754_v56  ;;  %v783_v55 = vmax.f32 %v763_v57, 0.0 }
 0x269   : > { %v2480_v59 = vpop.f32.mrf.mxu0 }
 0x26a   : > { %v766_v1 = vadd.f32 %v2480_v59, %v2360_v52  ;;  %v781_v14 = vmax.f32 %v755_v54, 0.0 }
 0x26b   : > { %v757_v4 = vpop.f32.mrf.mxu0 }
 0x26c   : > { %v784_v8 = vmax.f32 %v766_v1, 0.0  ;;  %v758_v10 = vadd.f32 %v2360_v52, %v757_v4  ;;  %834 = sbr.rel (%p2374_p13) target bundleno = 627 (0x273), region = 56 }
 0x26e   : > { %v3121_v15 = vpack.c.bf16 %v784_v8, %v783_v55  ;;  %v782_v16 = vmax.f32 %v758_v10, 0.0 }
 0x270   : > { %v3123_v17 = vpack.c.bf16 %v782_v16, %v781_v14 }
 0x271   : > { %v2742_v60 = vmov 0.0  }
 0x272   : > { %835 = vst [vmem:[%s3126_s13] sm:$0xff] %v2742_v60 }
 0x273 PF: > { %v864_v7 = vld [vmem:[#allocation2 + $0x1c0] sm:$0xff]  ;;  %v865_v9 = vld [vmem:[#allocation2 + $0x1c8] sm:$0xff]  ;;  %1082 = vmatprep.mubr.bf16.mxu1 %v2740_v2  ;;  %1195 = vmatprep.mubr.bf16.mxu0 %v2740_v2  ;;  %vm3796_vm15 = vnez %v3794_v40  ;;  %s2444_s16 = sshll.u32 %s2722_s28, 7  ;;  %s2257_s18 = sshll.u32 %s3126_s13, 4  ;;  %s2258_s18 = int_to_ptr.vmem [resolvable:$true] %s2257_s18 }
 0x274   : > { %v866_v5 = vld [vmem:[#allocation2 + $0x1e0] sm:$0xff]  ;;  %v867_v11 = vld [vmem:[#allocation2 + $0x1e8] sm:$0xff]  ;;  %s2255_s9 = scalar_lea.hbm %s3755_s7, %s2444_s16  ;;  %s2241_s27 = scalar_lea.sflag [#allocation4], %s323_s22 }
 0x275   : > { %v2404_v52 = vcombine.high %v864_v7, %v866_v5  ;;  %v2403_v58 = vcombine.low %v864_v7, %v866_v5  ;;  %v860_v13 = vld [vmem:[#allocation2 + $0x180] sm:$0xff]  ;;  %v2406_v20 = vcombine.high %v865_v9, %v867_v11  ;;  %v2405_v28 = vcombine.low %v865_v9, %v867_v11  ;;  %v861_v41 = vld [vmem:[#allocation2 + $0x188] sm:$0xff]  ;;  %s2638_s10 = scalar_lea.vmem %s2258_s18, 128  ;;  %s2744_s28 = smov [#allocation5]  }
 0x276   : > { %v862_v18 = vld [vmem:[#allocation2 + $0x1a0] sm:$0xff]  ;;  %v863_v42 = vld [vmem:[#allocation2 + $0x1a8] sm:$0xff]  ;;  %p2639_p0 = scmp.ne.s32.totalorder %s2258_s18, %s2638_s10  ;;  %s2642_s17 = sshll.u32 %s2744_s28, 4  ;;  %s2643_s17 = int_to_ptr.vmem [resolvable:$false] %s2642_s17 }
 0x277   : > { %v2400_v37 = vcombine.high %v860_v13, %v862_v18  ;;  %v856_v43 = vld [vmem:[#allocation2 + $0x140] sm:$0xff]  ;;  %1050 = vmatprep.subr.bf16.mxu1 %v2404_v52  ;;  %v2402_v44 = vcombine.high %v861_v41, %v863_v42  ;;  %v857_v45 = vld [vmem:[#allocation2 + $0x148] sm:$0xff]  ;;  %1163 = vmatprep.subr.bf16.mxu0 %v2406_v20  ;;  %v2399_v47 = vcombine.low %v860_v13, %v862_v18  ;;  %s2644_s20 = scalar_lea.vmem %s2643_s17, 256  ;;  %p2645_p4 = scmp.lt.s32.totalorder %s2258_s18, %s2643_s17 }
 0x278   : > { %v858_v38 = vld [vmem:[#allocation2 + $0x160] sm:$0xff]  ;;  %v859_v46 = vld [vmem:[#allocation2 + $0x168] sm:$0xff]  ;;  %1051 = vmatpush1.bf16.msra.mxu1 %v2403_v58  ;;  %1164 = vmatpush1.bf16.msra.mxu0 %v2405_v28  ;;  %v2401_v48 = vcombine.low %v861_v41, %v863_v42  ;;  %p2640_p1 = pnand %p2639_p0, %p2835_p3  ;;  %p2646_p5 = scmp.lt.s32.totalorder %s2644_s20, %s2638_s10 }
 0x279   : > { %1052 = vmatprep.subr.bf16.mxu1 %v2400_v37  ;;  %v2396_v50 = vcombine.high %v856_v43, %v858_v38  ;;  %1165 = vmatprep.subr.bf16.mxu0 %v2402_v44  ;;  %v2398_v53 = vcombine.high %v857_v45, %v859_v46  ;;  %v852_v56 = vld [vmem:[#allocation2 + $0x100] sm:$0xff]  ;;  %v853_v59 = vld [vmem:[#allocation2 + $0x108] sm:$0xff]  ;;  %v2395_v1 = vcombine.low %v856_v43, %v858_v38 }
 0x27a   : > { %v854_v57 = vld [vmem:[#allocation2 + $0x120] sm:$0xff]  ;;  %v855_v54 = vld [vmem:[#allocation2 + $0x128] sm:$0xff]  ;;  %v2397_v4 = vcombine.low %v857_v45, %v859_v46  ;;  %p2641_p2 = pneg %p2640_p1  ;;  %p2647_p6 = por %p2646_p5, %p2645_p4 }
 0x27b   : > { %v2392_v55 = vcombine.high %v852_v56, %v854_v57  ;;  %v2394_v8 = vcombine.high %v853_v59, %v855_v54  ;;  %v848_v10 = vld [vmem:[#allocation2 + $0xc0] sm:$0xff]  ;;  %v849_v16 = vld [vmem:[#allocation2 + $0xc8] sm:$0xff]  ;;  %v2391_v7 = vcombine.low %v852_v56, %v854_v57  ;;  %v2393_v5 = vcombine.low %v853_v59, %v855_v54 }
 0x27c   : > { %1053 = vmatpush1.bf16.msra.mxu1 %v2399_v47  ;;  %1166 = vmatpush1.bf16.msra.mxu0 %v2401_v48  ;;  %v850_v14 = vld [vmem:[#allocation2 + $0xe0] sm:$0xff]  ;;  %v851_v60 = vld [vmem:[#allocation2 + $0xe8] sm:$0xff]  ;;  %p2648_p7 = pnand %p2647_p6, %p2641_p2 }
 0x27d   : > { %1054 = vmatprep.subr.bf16.mxu1 %v2396_v50  ;;  %1167 = vmatprep.subr.bf16.mxu0 %v2398_v53  ;;  %v2388_v9 = vcombine.high %v848_v10, %v850_v14  ;;  %v2390_v52 = vcombine.high %v849_v16, %v851_v60  ;;  %v844_v11 = vld [vmem:[#allocation2 + $0x80] sm:$0xff]  ;;  %v845_v13 = vld [vmem:[#allocation2 + $0x88] sm:$0xff]  ;;  %v2387_v20 = vcombine.low %v848_v10, %v850_v14  ;;  %v1585_v10 = vld [vmem:[#allocation2 + $0x1d8] sm:$0xff] }
 0x27e   : > { %v846_v58 = vld [vmem:[#allocation2 + $0xa0] sm:$0xff]  ;;  %v847_v18 = vld [vmem:[#allocation2 + $0xa8] sm:$0xff]  ;;  %v2389_v28 = vcombine.low %v849_v16, %v851_v60  ;;  %v1587_v14 = vld [vmem:[#allocation2 + $0x1f8] sm:$0xff] }
 0x27f   : > { %v2384_v37 = vcombine.high %v844_v11, %v846_v58  ;;  %v2386_v41 = vcombine.high %v845_v13, %v847_v18  ;;  %v840_v42 = vld [vmem:[#allocation2 + $0x40] sm:$0xff]  ;;  %v841_v44 = vld [vmem:[#allocation2 + $0x48] sm:$0xff]  ;;  %v2383_v45 = vcombine.low %v844_v11, %v846_v58  ;;  %v2385_v46 = vcombine.low %v845_v13, %v847_v18  ;;  %v1581_v58 = vld [vmem:[#allocation2 + $0x198] sm:$0xff] }
 0x280   : > { %1055 = vmatpush1.bf16.msra.mxu1 %v2395_v1  ;;  %1168 = vmatpush1.bf16.msra.mxu0 %v2397_v4  ;;  %v842_v43 = vld [vmem:[#allocation2 + $0x60] sm:$0xff]  ;;  %v843_v38 = vld [vmem:[#allocation2 + $0x68] sm:$0xff]  ;;  %v1583_v13 = vld [vmem:[#allocation2 + $0x1b8] sm:$0xff] }
 0x281   : > { %1056 = vmatprep.subr.bf16.mxu1 %v2392_v55  ;;  %1169 = vmatprep.subr.bf16.mxu0 %v2394_v8  ;;  %v2380_v47 = vcombine.high %v840_v42, %v842_v43  ;;  %v2382_v48 = vcombine.high %v841_v44, %v843_v38  ;;  %v836_v50 = vld [vmem:[#allocation2] sm:$0xff]  ;;  %v837_v56 = vld [vmem:[#allocation2 + $0x8] sm:$0xff]  ;;  %v2379_v59 = vcombine.low %v840_v42, %v842_v43  ;;  %v1584_v55 = vld [vmem:[#allocation2 + $0x1d0] sm:$0xff] }
 0x282   : > { %v838_v53 = vld [vmem:[#allocation2 + $0x20] sm:$0xff]  ;;  %v839_v57 = vld [vmem:[#allocation2 + $0x28] sm:$0xff]  ;;  %v2381_v54 = vcombine.low %v841_v44, %v843_v38  ;;  %v1586_v8 = vld [vmem:[#allocation2 + $0x1f0] sm:$0xff] }
 0x283   : > { %v2376_v1 = vcombine.high %v836_v50, %v838_v53  ;;  %v2378_v4 = vcombine.high %v837_v56, %v839_v57  ;;  %v2375_v16 = vcombine.low %v836_v50, %v838_v53  ;;  %v2377_v60 = vcombine.low %v837_v56, %v839_v57  ;;  %v1577_v43 = vld [vmem:[#allocation2 + $0x158] sm:$0xff] }
 0x284   : > { %1057 = vmatpush1.bf16.msra.mxu1 %v2391_v7  ;;  %1170 = vmatpush1.bf16.msra.mxu0 %v2393_v5  ;;  %v2436_v7 = vcombine.high %v1584_v55, %v1586_v8  ;;  %v3132_v5 = vcombine.high %v1585_v10, %v1587_v14  ;;  %v2435_v11 = vcombine.low %v1584_v55, %v1586_v8  ;;  %v1579_v44 = vld [vmem:[#allocation2 + $0x178] sm:$0xff] }
 0x285   : > { %1058 = vmatprep.subr.bf16.mxu1 %v2388_v9  ;;  %1171 = vmatprep.subr.bf16.mxu0 %v2390_v52  ;;  %v1580_v9 = vld [vmem:[#allocation2 + $0x190] sm:$0xff]  ;;  %v1573_v50 = vld [vmem:[#allocation2 + $0x118] sm:$0xff] }
 0x286   : > { %v1582_v52 = vld [vmem:[#allocation2 + $0x1b0] sm:$0xff]  ;;  %v1575_v53 = vld [vmem:[#allocation2 + $0x138] sm:$0xff] }
 0x287   : > { %v2432_v18 = vcombine.high %v1580_v9, %v1582_v52  ;;  %v2431_v42 = vcombine.low %v1580_v9, %v1582_v52  ;;  %v1569_v55 = vld [vmem:[#allocation2 + $0xd8] sm:$0xff] }
 0x288   : > { %1059 = vmatpush1.bf16.msra.mxu1 %v2387_v20  ;;  %1172 = vmatpush1.bf16.msra.mxu0 %v2389_v28  ;;  %v3134_v20 = vcombine.low %v1585_v10, %v1587_v14  ;;  %v1576_v28 = vld [vmem:[#allocation2 + $0x150] sm:$0xff]  ;;  %v1571_v8 = vld [vmem:[#allocation2 + $0xf8] sm:$0xff] }
 0x289   : > { %1060 = vmatprep.subr.bf16.mxu1 %v2384_v37  ;;  %1173 = vmatprep.subr.bf16.mxu0 %v2386_v41  ;;  %v1578_v37 = vld [vmem:[#allocation2 + $0x170] sm:$0xff]  ;;  %v3138_v41 = vcombine.high %v1581_v58, %v1583_v13  ;;  %v3163_v9 = vcombine.high %v1569_v55, %v1571_v8  ;;  %v1565_v52 = vld [vmem:[#allocation2 + $0x98] sm:$0xff] }
 0x28a   : > { %v2428_v38 = vcombine.high %v1576_v28, %v1578_v37  ;;  %v2427_v56 = vcombine.low %v1576_v28, %v1578_v37  ;;  %v1560_v28 = vld [vmem:[#allocation2 + $0x50] sm:$0xff] }
 0x28b   : > { %v1562_v37 = vld [vmem:[#allocation2 + $0x70] sm:$0xff] }
 0x28c   : > { %1061 = vmatpush1.bf16.msra.mxu1 %v2383_v45  ;;  %1174 = vmatpush1.bf16.msra.mxu0 %v2385_v46  ;;  %v3144_v45 = vcombine.low %v1581_v58, %v1583_v13  ;;  %v1572_v46 = vld [vmem:[#allocation2 + $0x110] sm:$0xff] }
 0x28d   : > { %1062 = vmatprep.subr.bf16.mxu1 %v2380_v47  ;;  %1175 = vmatprep.subr.bf16.mxu0 %v2382_v48  ;;  %v1574_v47 = vld [vmem:[#allocation2 + $0x130] sm:$0xff]  ;;  %v3147_v48 = vcombine.high %v1577_v43, %v1579_v44 }
 0x28e   : > { %v2424_v57 = vcombine.high %v1572_v46, %v1574_v47  ;;  %v2423_v10 = vcombine.low %v1572_v46, %v1574_v47  ;;  %v2412_v46 = vcombine.high %v1560_v28, %v1562_v37 }
 0x290   : > { %1063 = vmatpush1.bf16.msra.mxu1 %v2379_v59  ;;  %1176 = vmatpush1.bf16.msra.mxu0 %v2381_v54  ;;  %v3150_v59 = vcombine.low %v1577_v43, %v1579_v44  ;;  %v1568_v54 = vld [vmem:[#allocation2 + $0xd0] sm:$0xff]  ;;  %v1561_v43 = vld [vmem:[#allocation2 + $0x58] sm:$0xff] }
 0x291   : > { %1064 = vmatprep.subr.bf16.mxu1 %v2376_v1  ;;  %1177 = vmatprep.subr.bf16.mxu0 %v2378_v4  ;;  %v1570_v1 = vld [vmem:[#allocation2 + $0xf0] sm:$0xff]  ;;  %v3154_v4 = vcombine.high %v1573_v50, %v1575_v53  ;;  %v1563_v44 = vld [vmem:[#allocation2 + $0x78] sm:$0xff] }
 0x292   : > { %v2420_v14 = vcombine.high %v1568_v54, %v1570_v1  ;;  %v2419_v58 = vcombine.low %v1568_v54, %v1570_v1  ;;  %v1559_v54 = vld [vmem:[#allocation2 + $0x38] sm:$0xff]  ;;  %v2411_v1 = vcombine.low %v1560_v28, %v1562_v37 }
 0x294   : > { %1065 = vmatpush1.bf16.msra.mxu1 %v2375_v16  ;;  %1178 = vmatpush1.bf16.msra.mxu0 %v2377_v60  ;;  %v3160_v16 = vcombine.low %v1573_v50, %v1575_v53  ;;  %v1564_v60 = vld [vmem:[#allocation2 + $0x90] sm:$0xff] }
 0x295   : > { %1770 = vmatprep.subr.bf16.mxu1 %v2436_v7  ;;  %1883 = vmatprep.subr.bf16.mxu0 %v3132_v5  ;;  %v1566_v7 = vld [vmem:[#allocation2 + $0xb0] sm:$0xff] }
 0x296   : > { %v2416_v13 = vcombine.high %v1564_v60, %v1566_v7  ;;  %v1556_v50 = vld [vmem:[#allocation2 + $0x10] sm:$0xff] }
 0x297   : > { %1083 = vmatmul.mubr.bf16.vlgmr.msra.gmra.mxu1 %v3111_v63  ;;  %1196 = vmatmul.mubr.bf16.vlgmr.msra.gmra.mxu0 %v3111_v63  ;;  %v1558_v53 = vld [vmem:[#allocation2 + $0x30] sm:$0xff] }
 0x298   : > { %1771 = vmatpush1.bf16.msra.mxu1 %v2435_v11  ;;  %1092 = vmatprep.mubr.bf16.mxu1 %v2740_v2  ;;  %v1567_v11 = vld [vmem:[#allocation2 + $0xb8] sm:$0xff] }
 0x299   : > { %1205 = vmatprep.mubr.bf16.mxu0 %v2740_v2  ;;  %1772 = vmatprep.subr.bf16.mxu1 %v2432_v18  ;;  %v3166_v18 = vcombine.low %v1569_v55, %v1571_v8  ;;  %v3176_v47 = vcombine.low %v1565_v52, %v1567_v11  ;;  %v2408_v55 = vcombine.high %v1556_v50, %v1558_v53 }
 0x29a   : > { %1884 = vmatpush1.bf16.msra.mxu0 %v3134_v20  ;;  %v2413_v8 = vcombine.low %v1561_v43, %v1563_v44 }
 0x29b   : > { %1885 = vmatprep.subr.bf16.mxu0 %v3138_v41 }
 0x29c   : > { %1773 = vmatpush1.bf16.msra.mxu1 %v2431_v42  ;;  %v3170_v42 = vcombine.high %v1565_v52, %v1567_v11 }
 0x29d   : > { %1774 = vmatprep.subr.bf16.mxu1 %v2428_v38  ;;  %v2415_v38 = vcombine.low %v1564_v60, %v1566_v7 }
 0x29e   : > { %1886 = vmatpush1.bf16.msra.mxu0 %v3144_v45 }
 0x29f   : > { %1093 = vmatmul.mubr.bf16.gmra.mxu1 %v3109_v12  ;;  %1887 = vmatprep.subr.bf16.mxu0 %v3147_v48 }
 0x2a0   : > { %1206 = vmatmul.mubr.bf16.gmra.mxu0 %v3109_v12  ;;  %1102 = vmatprep.mubr.bf16.mxu1 %v2740_v2 }
 0x2a1   : > { %1215 = vmatprep.mubr.bf16.mxu0 %v2740_v2  ;;  %1775 = vmatpush1.bf16.msra.mxu1 %v2427_v56  ;;  %v2414_v56 = vcombine.high %v1561_v43, %v1563_v44 }
 0x2a2   : > { %1776 = vmatprep.subr.bf16.mxu1 %v2424_v57  ;;  %1888 = vmatpush1.bf16.msra.mxu0 %v3150_v59  ;;  %v1557_v57 = vld [vmem:[#allocation2 + $0x18] sm:$0xff] }
 0x2a3   : > { %1889 = vmatprep.subr.bf16.mxu0 %v3154_v4  ;;  %v2409_v60 = vcombine.low %v1557_v57, %v1559_v54 }
 0x2a5   : > { %1777 = vmatpush1.bf16.msra.mxu1 %v2423_v10  ;;  %v2410_v10 = vcombine.high %v1557_v57, %v1559_v54 }
 0x2a6   : > { %1778 = vmatprep.subr.bf16.mxu1 %v2420_v14  ;;  %1890 = vmatpush1.bf16.msra.mxu0 %v3160_v16  ;;  %v2407_v14 = vcombine.low %v1556_v50, %v1558_v53 }
 0x2a7   : > { %1103 = vmatmul.mubr.bf16.gmra.mxu1 %v3115_v21  ;;  %1891 = vmatprep.subr.bf16.mxu0 %v3163_v9 }
 0x2a8   : > { %1216 = vmatmul.mubr.bf16.gmra.mxu0 %v3115_v21  ;;  %1112 = vmatprep.mubr.bf16.mxu1 %v2740_v2 }
 0x2a9   : > { %1225 = vmatprep.mubr.bf16.mxu0 %v2740_v2  ;;  %1779 = vmatpush1.bf16.msra.mxu1 %v2419_v58 }
 0x2aa   : > { %1780 = vmatprep.subr.bf16.mxu1 %v2416_v13  ;;  %1892 = vmatpush1.bf16.msra.mxu0 %v3166_v18 }
 0x2ab   : > { %1893 = vmatprep.subr.bf16.mxu0 %v3170_v42 }
 0x2ad   : > { %1781 = vmatpush1.bf16.msra.mxu1 %v2415_v38 }
 0x2ae   : > { %1782 = vmatprep.subr.bf16.mxu1 %v2412_v46  ;;  %1894 = vmatpush1.bf16.msra.mxu0 %v3176_v47 }
 0x2af   : > { %1113 = vmatmul.mubr.bf16.gmra.mxu1 %v3113_v19  ;;  %1895 = vmatprep.subr.bf16.mxu0 %v2414_v56 }
 0x2b0   : > { %1226 = vmatmul.mubr.bf16.gmra.mxu0 %v3113_v19  ;;  %1122 = vmatprep.mubr.bf16.mxu1 %v2740_v2 }
 0x2b1   : > { %1235 = vmatprep.mubr.bf16.mxu0 %v2740_v2  ;;  %1783 = vmatpush1.bf16.msra.mxu1 %v2411_v1 }
 0x2b2   : > { %1784 = vmatprep.subr.bf16.mxu1 %v2408_v55  ;;  %1896 = vmatpush1.bf16.msra.mxu0 %v2413_v8 }
 0x2b3   : > { %1897 = vmatprep.subr.bf16.mxu0 %v2410_v10 }
 0x2b5   : > { %1785 = vmatpush1.bf16.msra.mxu1 %v2407_v14 }
 0x2b6   : > { %1898 = vmatpush1.bf16.msra.mxu0 %v2409_v60  ;;  %2481 = vmatprep.subr.bf16.mxu1 %v3132_v5 }
 0x2b7   : > { %1123 = vmatmul.mubr.bf16.gmra.mxu1 %v3119_v51 }
 0x2b8   : > { %1236 = vmatmul.mubr.bf16.gmra.mxu0 %v3119_v51  ;;  %1132 = vmatprep.mubr.bf16.mxu1 %v2740_v2 }
 0x2b9   : > { %1245 = vmatprep.mubr.bf16.mxu0 %v2740_v2 }
 0x2bf   : > { %1133 = vmatmul.mubr.bf16.gmra.mxu1 %v3117_v49 }
 0x2c0   : > { %1246 = vmatmul.mubr.bf16.gmra.mxu0 %v3117_v49  ;;  %1142 = vmatprep.mubr.bf16.mxu1 %v2740_v2 }
 0x2c1   : > { %1255 = vmatprep.mubr.bf16.mxu0 %v2740_v2 }
 0x2c7   : > { %1143 = vmatmul.mubr.bf16.gmra.mxu1 %v3123_v17 }
 0x2c8   : > { %1256 = vmatmul.mubr.bf16.gmra.mxu0 %v3123_v17  ;;  %1152 = vmatprep.mubr.bf16.mxu1 %v2740_v2 }
 0x2c9   : > { %1265 = vmatprep.mubr.bf16.mxu0 %v2740_v2 }
 0x2cf   : > { %1153 = vmatmul.mubr.bf16.gmra.mxu1 %v3121_v15 }
 0x2d0   : > { %1266 = vmatmul.mubr.bf16.gmra.mxu0 %v3121_v15  ;;  %1802 = vmatprep.mubr.bf16.mxu1 %v2740_v2 }
 0x2d1   : > { %1915 = vmatprep.mubr.bf16.mxu0 %v2740_v2 }
 0x2d7   : > { %1803 = vmatmul.mubr.bf16.vlgmr.msra.gmra.mxu1 %v3111_v63 }
 0x2d8   : > { %1916 = vmatmul.mubr.bf16.vlgmr.msra.gmra.mxu0 %v3111_v63  ;;  %2489 = vmatpush1.bf16.msra.mxu1 %v3134_v20  ;;  %v884_v63 = vsub.s32 3, %v2887_v3 }
 0x2d9   : > { %1812 = vmatprep.mubr.bf16.mxu1 %v2740_v2  ;;  %1925 = vmatprep.mubr.bf16.mxu0 %v2740_v2 }
 0x2da   : > { %2482 = vmatprep.subr.bf16.mxu1 %v3138_v41 }
 0x2dc   : > { %2490 = vmatpush1.bf16.msra.mxu1 %v3144_v45 }
 0x2dd   : > { %2483 = vmatprep.subr.bf16.mxu1 %v3147_v48  ;;  %v1588_v48 = vld [vmem:[%s3754_s6 + $0x4] sm:$0xf] }
 0x2de   : > { %v3266_v28 = vrot.slane %v1588_v48, %v3047_v61  ;;  %v3269_v37 = vrot.slane %v1588_v48, %v3050_v62  ;;  %v3273_v38 = vrot.slane %v1588_v48, %v3056_v6  ;;  %v3275_v46 = vrot.slane %v1588_v48, %v884_v63 }
 0x2df   : > { %1813 = vmatmul.mubr.bf16.gmra.mxu1 %v3109_v12 }
 0x2e0   : > { %1926 = vmatmul.mubr.bf16.gmra.mxu0 %v3109_v12  ;;  %1822 = vmatprep.mubr.bf16.mxu1 %v2740_v2  ;;  %v868_v12 = vld [vmem:[%s3754_s6] sm:$0xf] }
 0x2e1   : > { %1935 = vmatprep.mubr.bf16.mxu0 %v2740_v2  ;;  %2491 = vmatpush1.bf16.msra.mxu1 %v3150_v59  ;;  %v3255_v5 = vrot.slane %v868_v12, %v884_v63 }
 0x2e2   : > { %2484 = vmatprep.subr.bf16.mxu1 %v3154_v4 }
 0x2e5   : > { %2492 = vmatpush1.bf16.msra.mxu1 %v3160_v16 }
 0x2e6   : > { %2485 = vmatprep.subr.bf16.mxu1 %v3163_v9 }
 0x2e7   : > { %1823 = vmatmul.mubr.bf16.gmra.mxu1 %v3115_v21 }
 0x2e8   : > { %1936 = vmatmul.mubr.bf16.gmra.mxu0 %v3115_v21  ;;  %1832 = vmatprep.mubr.bf16.mxu1 %v2740_v2  ;;  %v3250_v21 = vrot.slane %v868_v12, %v3056_v6 }
 0x2e9   : > { %1945 = vmatprep.mubr.bf16.mxu0 %v2740_v2  ;;  %2493 = vmatpush1.bf16.msra.mxu1 %v3166_v18 }
 0x2ea   : > { %2486 = vmatprep.subr.bf16.mxu1 %v3170_v42 }
 0x2ed   : > { %2494 = vmatpush1.bf16.msra.mxu1 %v3176_v47 }
 0x2ee   : > { %2487 = vmatprep.subr.bf16.mxu1 %v2414_v56 }
 0x2ef   : > { %1833 = vmatmul.mubr.bf16.gmra.mxu1 %v3113_v19 }
 0x2f0   : > { %1946 = vmatmul.mubr.bf16.gmra.mxu0 %v3113_v19  ;;  %1842 = vmatprep.mubr.bf16.mxu1 %v2740_v2  ;;  %v3247_v19 = vrot.slane %v868_v12, %v3047_v61 }
 0x2f1   : > { %1955 = vmatprep.mubr.bf16.mxu0 %v2740_v2  ;;  %2495 = vmatpush1.bf16.msra.mxu1 %v2413_v8 }
 0x2f2   : > { %2488 = vmatprep.subr.bf16.mxu1 %v2410_v10 }
 0x2f5   : > { %2496 = vmatpush1.bf16.msra.mxu1 %v2409_v60 }
 0x2f7   : > { %1843 = vmatmul.mubr.bf16.gmra.mxu1 %v3119_v51 }
 0x2f8   : > { %1956 = vmatmul.mubr.bf16.gmra.mxu0 %v3119_v51  ;;  %1852 = vmatprep.mubr.bf16.mxu1 %v2740_v2  ;;  %v2743_v51 = vmov 1966171168  }
 0x2f9   : > { %1965 = vmatprep.mubr.bf16.mxu0 %v2740_v2 }
 0x2ff   : > { %1853 = vmatmul.mubr.bf16.gmra.mxu1 %v3117_v49 }
 0x300   : > { %1966 = vmatmul.mubr.bf16.gmra.mxu0 %v3117_v49  ;;  %1862 = vmatprep.mubr.bf16.mxu1 %v2740_v2  ;;  %v3253_v49 = vrot.slane %v868_v12, %v3050_v62 }
 0x301   : > { %1975 = vmatprep.mubr.bf16.mxu0 %v2740_v2 }
 0x307   : > { %1863 = vmatmul.mubr.bf16.gmra.mxu1 %v3123_v17 }
 0x308   : > { %1976 = vmatmul.mubr.bf16.gmra.mxu0 %v3123_v17  ;;  %1872 = vmatprep.mubr.bf16.mxu1 %v2740_v2  ;;  %v1528_v17 = vunpack.c.l.s4 %v2743_v51 }
 0x30a   : > { %v1529_v7 = vunpack.c.0.s8 %v1528_v17 }
 0x30c   : > { %v3281_v56 = vsub.s32 %v1529_v7, %v2887_v3 }
 0x30f   : > { %1873 = vmatmul.mubr.bf16.gmra.mxu1 %v3121_v15 }
 0x310   : > { %1985 = vmatprep.mubr.bf16.mxu1 %v2740_v2 }
 0x317   : > { %1986 = vmatmul.mubr.bf16.vlgmr.msra.gmra.mxu1 %v3121_v15 }
 0x357   : > { %v1084_v2 = vpop.f32.mrf.mxu1  ;;  %v1197_v20 = vpop.f32.mrf.mxu0 }
 0x358   : > { %v1085_v15 = vadd.f32 %v1084_v2, %v3247_v19  ;;  %v1198_v41 = vadd.f32 %v1197_v20, %v3250_v21 }
 0x359   : > { %v1086_v45 = vpop.f32.mrf.mxu1  ;;  %v1199_v16 = vpop.f32.mrf.mxu0 }
 0x35a   : > { %v1276_v59 = vmax.f32 %v1085_v15, 0.0  ;;  %v1087_v4 = vadd.f32 %v1086_v45, %v3253_v49  ;;  %v1278_v9 = vmax.f32 %v1198_v41, 0.0  ;;  %v1200_v52 = vadd.f32 %v1199_v16, %v3255_v5 }
 0x35b   : > { %v1088_v11 = vpop.f32.mrf.mxu1  ;;  %v1201_v18 = vpop.f32.mrf.mxu0 }
 0x35c   : > { %v1277_v58 = vmax.f32 %v1087_v4, 0.0  ;;  %v1089_v13 = vadd.f32 %v1088_v11, %v3247_v19  ;;  %v1279_v42 = vmax.f32 %v1200_v52, 0.0  ;;  %v1202_v43 = vadd.f32 %v1201_v18, %v3250_v21 }
 0x35d   : > { %v1090_v44 = vpop.f32.mrf.mxu1  ;;  %v1372_v47 = vsel %vm2911_vm0, %v1276_v59, 0.0  ;;  %v1203_v61 = vpop.f32.mrf.mxu0  ;;  %v1374_v62 = vsel %vm2911_vm0, %v1278_v9, 0.0 }
 0x35e   : > { %v1280_v50 = vmax.f32 %v1089_v13, 0.0  ;;  %v1091_v53 = vadd.f32 %v1090_v44, %v3253_v49  ;;  %v1373_v57 = vsel %vm2911_vm0, %v1277_v58, 0.0  ;;  %v1282_v6 = vmax.f32 %v1202_v43, 0.0 }
 0x35f   : > { %v1204_v54 = vadd.f32 %v1203_v61, %v3255_v5  ;;  %v1094_v1 = vpop.f32.mrf.mxu1  ;;  %v1375_v55 = vsel %vm2911_vm0, %v1279_v42, 0.0 }
 0x360   : > { %v1376_v8 = vsel %vm2915_vm1, %v1280_v50, 0.0  ;;  %v1281_v10 = vmax.f32 %v1091_v53, 0.0  ;;  %v1095_v3 = vadd.f32 %v1094_v1, %v3247_v19  ;;  %v1207_v14 = vpop.f32.mrf.mxu0  ;;  %v1378_v12 = vsel %vm2915_vm1, %v1282_v6, 0.0 }
 0x361   : > { %v1436_v60 = vmax.f32 %v1372_v47, %v1376_v8  ;;  %v1283_v63 = vmax.f32 %v1204_v54, 0.0  ;;  %v1208_v51 = vadd.f32 %v1207_v14, %v3250_v21  ;;  %v1096_v17 = vpop.f32.mrf.mxu1  ;;  %v1478_v2 = vmax.f32 %v1374_v62, %v1378_v12 }
 0x362   : > { %v1377_v15 = vsel %vm2915_vm1, %v1281_v10, 0.0  ;;  %v1284_v20 = vmax.f32 %v1095_v3, 0.0  ;;  %v1097_v41 = vadd.f32 %v1096_v17, %v3253_v49  ;;  %v1209_v45 = vpop.f32.mrf.mxu0 }
 0x363   : > { %v1457_v48 = vmax.f32 %v1373_v57, %v1377_v15  ;;  %v1379_v59 = vsel %vm2915_vm1, %v1283_v63, 0.0  ;;  %v1286_v4 = vmax.f32 %v1208_v51, 0.0  ;;  %v1210_v16 = vadd.f32 %v1209_v45, %v3255_v5  ;;  %v1098_v7 = vpop.f32.mrf.mxu1 }
 0x364   : > { %v1499_v9 = vmax.f32 %v1375_v55, %v1379_v59  ;;  %v1380_v52 = vsel %vm2919_vm2, %v1284_v20, 0.0  ;;  %v1285_v11 = vmax.f32 %v1097_v41, 0.0  ;;  %v1099_v58 = vadd.f32 %v1098_v7, %v3247_v19  ;;  %v1211_v13 = vpop.f32.mrf.mxu0 }
 0x365   : > { %v1437_v18 = vmax.f32 %v1436_v60, %v1380_v52  ;;  %v1382_v42 = vsel %vm2919_vm2, %v1286_v4, 0.0  ;;  %v1287_v43 = vmax.f32 %v1210_v16, 0.0  ;;  %v1212_v44 = vadd.f32 %v1211_v13, %v3250_v21  ;;  %v1100_v47 = vpop.f32.mrf.mxu1 }
 0x366   : > { %v1479_v50 = vmax.f32 %v1478_v2, %v1382_v42  ;;  %v1381_v53 = vsel %vm2919_vm2, %v1285_v11, 0.0  ;;  %v1288_v61 = vmax.f32 %v1099_v58, 0.0  ;;  %v1101_v62 = vadd.f32 %v1100_v47, %v3253_v49  ;;  %v1213_v57 = vpop.f32.mrf.mxu0 }
 0x367   : > { %v1458_v6 = vmax.f32 %v1457_v48, %v1381_v53  ;;  %v1383_v54 = vsel %vm2919_vm2, %v1287_v43, 0.0  ;;  %v1290_v1 = vmax.f32 %v1212_v44, 0.0  ;;  %v1214_v55 = vadd.f32 %v1213_v57, %v3255_v5  ;;  %v1104_v8 = vpop.f32.mrf.mxu1 }
 0x368   : > { %v1500_v10 = vmax.f32 %v1499_v9, %v1383_v54  ;;  %v1384_v3 = vsel %vm2923_vm3, %v1288_v61, 0.0  ;;  %v1289_v14 = vmax.f32 %v1101_v62, 0.0  ;;  %v1105_v60 = vadd.f32 %v1104_v8, %v3247_v19  ;;  %v1217_v12 = vpop.f32.mrf.mxu0 }
 0x369   : > { %v1438_v63 = vmax.f32 %v1437_v18, %v1384_v3  ;;  %v1386_v51 = vsel %vm2923_vm3, %v1290_v1, 0.0  ;;  %v1291_v17 = vmax.f32 %v1214_v55, 0.0  ;;  %v1218_v2 = vadd.f32 %v1217_v12, %v3250_v21  ;;  %v1106_v15 = vpop.f32.mrf.mxu1 }
 0x36a   : > { %v1480_v20 = vmax.f32 %v1479_v50, %v1386_v51  ;;  %v1385_v41 = vsel %vm2923_vm3, %v1289_v14, 0.0  ;;  %v1292_v45 = vmax.f32 %v1105_v60, 0.0  ;;  %v1107_v48 = vadd.f32 %v1106_v15, %v3253_v49  ;;  %v1219_v59 = vpop.f32.mrf.mxu0 }
 0x36b   : > { %v1459_v4 = vmax.f32 %v1458_v6, %v1385_v41  ;;  %v1387_v16 = vsel %vm2923_vm3, %v1291_v17, 0.0  ;;  %v1294_v7 = vmax.f32 %v1218_v2, 0.0  ;;  %v1220_v9 = vadd.f32 %v1219_v59, %v3255_v5  ;;  %v1108_v52 = vpop.f32.mrf.mxu1 }
 0x36c   : > { %v1501_v11 = vmax.f32 %v1500_v10, %v1387_v16  ;;  %v1388_v58 = vsel %vm2927_vm4, %v1292_v45, 0.0  ;;  %v1293_v13 = vmax.f32 %v1107_v48, 0.0  ;;  %v1109_v18 = vadd.f32 %v1108_v52, %v3247_v19  ;;  %v1221_v42 = vpop.f32.mrf.mxu0 }
 0x36d   : > { %v1439_v43 = vmax.f32 %v1438_v63, %v1388_v58  ;;  %v1390_v44 = vsel %vm2927_vm4, %v1294_v7, 0.0  ;;  %v1295_v47 = vmax.f32 %v1220_v9, 0.0  ;;  %v1222_v50 = vadd.f32 %v1221_v42, %v3250_v21  ;;  %v1110_v53 = vpop.f32.mrf.mxu1 }
 0x36e   : > { %v1481_v61 = vmax.f32 %v1480_v20, %v1390_v44  ;;  %v1389_v62 = vsel %vm2927_vm4, %v1293_v13, 0.0  ;;  %v1296_v57 = vmax.f32 %v1109_v18, 0.0  ;;  %v1111_v6 = vadd.f32 %v1110_v53, %v3253_v49  ;;  %v1223_v54 = vpop.f32.mrf.mxu0 }
 0x36f   : > { %v1460_v1 = vmax.f32 %v1459_v4, %v1389_v62  ;;  %v1391_v55 = vsel %vm2927_vm4, %v1295_v47, 0.0  ;;  %v1298_v8 = vmax.f32 %v1222_v50, 0.0  ;;  %v1224_v10 = vadd.f32 %v1223_v54, %v3255_v5  ;;  %v1114_v3 = vpop.f32.mrf.mxu1 }
 0x370   : > { %v1502_v14 = vmax.f32 %v1501_v11, %v1391_v55  ;;  %v1392_v60 = vsel %vm2931_vm5, %v1296_v57, 0.0  ;;  %v1297_v12 = vmax.f32 %v1111_v6, 0.0  ;;  %v1115_v63 = vadd.f32 %v1114_v3, %v3247_v19  ;;  %v1227_v51 = vpop.f32.mrf.mxu0 }
 0x371   : > { %v1440_v17 = vmax.f32 %v1439_v43, %v1392_v60  ;;  %v1394_v2 = vsel %vm2931_vm5, %v1298_v8, 0.0  ;;  %v1299_v15 = vmax.f32 %v1224_v10, 0.0  ;;  %v1228_v20 = vadd.f32 %v1227_v51, %v3250_v21  ;;  %v1116_v41 = vpop.f32.mrf.mxu1 }
 0x372   : > { %v1482_v45 = vmax.f32 %v1481_v61, %v1394_v2  ;;  %v1393_v48 = vsel %vm2931_vm5, %v1297_v12, 0.0  ;;  %v1300_v59 = vmax.f32 %v1115_v63, 0.0  ;;  %v1117_v4 = vadd.f32 %v1116_v41, %v3253_v49  ;;  %v1229_v16 = vpop.f32.mrf.mxu0 }
 0x373   : > { %v1461_v7 = vmax.f32 %v1460_v1, %v1393_v48  ;;  %v1395_v9 = vsel %vm2931_vm5, %v1299_v15, 0.0  ;;  %v1302_v52 = vmax.f32 %v1228_v20, 0.0  ;;  %v1230_v11 = vadd.f32 %v1229_v16, %v3255_v5  ;;  %v1118_v58 = vpop.f32.mrf.mxu1 }
 0x374   : > { %v1503_v13 = vmax.f32 %v1502_v14, %v1395_v9  ;;  %v1396_v18 = vsel %vm2938_vm6, %v1300_v59, 0.0  ;;  %v1301_v42 = vmax.f32 %v1117_v4, 0.0  ;;  %v1119_v43 = vadd.f32 %v1118_v58, %v3247_v19  ;;  %v1231_v44 = vpop.f32.mrf.mxu0 }
 0x375   : > { %v1441_v47 = vmax.f32 %v1440_v17, %v1396_v18  ;;  %v1398_v50 = vsel %vm2938_vm6, %v1302_v52, 0.0  ;;  %v1303_v53 = vmax.f32 %v1230_v11, 0.0  ;;  %v1232_v61 = vadd.f32 %v1231_v44, %v3250_v21  ;;  %v1120_v62 = vpop.f32.mrf.mxu1 }
 0x376   : > { %v1483_v57 = vmax.f32 %v1482_v45, %v1398_v50  ;;  %v1397_v6 = vsel %vm2938_vm6, %v1301_v42, 0.0  ;;  %v1304_v54 = vmax.f32 %v1119_v43, 0.0  ;;  %v1121_v1 = vadd.f32 %v1120_v62, %v3253_v49  ;;  %v1233_v55 = vpop.f32.mrf.mxu0 }
 0x377   : > { %v1462_v8 = vmax.f32 %v1461_v7, %v1397_v6  ;;  %v1399_v10 = vsel %vm2938_vm6, %v1303_v53, 0.0  ;;  %v1306_v3 = vmax.f32 %v1232_v61, 0.0  ;;  %v1234_v14 = vadd.f32 %v1233_v55, %v3255_v5  ;;  %v1124_v60 = vpop.f32.mrf.mxu1 }
 0x378   : > { %v1504_v12 = vmax.f32 %v1503_v13, %v1399_v10  ;;  %v1400_v63 = vsel %vm2942_vm7, %v1304_v54, 0.0  ;;  %v1305_v51 = vmax.f32 %v1121_v1, 0.0  ;;  %v1125_v17 = vadd.f32 %v1124_v60, %v3247_v19  ;;  %v1237_v2 = vpop.f32.mrf.mxu0 }
 0x379   : > { %v1442_v15 = vmax.f32 %v1441_v47, %v1400_v63  ;;  %v1402_v20 = vsel %vm2942_vm7, %v1306_v3, 0.0  ;;  %v1307_v41 = vmax.f32 %v1234_v14, 0.0  ;;  %v1238_v45 = vadd.f32 %v1237_v2, %v3250_v21  ;;  %v1126_v48 = vpop.f32.mrf.mxu1 }
 0x37a   : > { %v1484_v59 = vmax.f32 %v1483_v57, %v1402_v20  ;;  %v1401_v4 = vsel %vm2942_vm7, %v1305_v51, 0.0  ;;  %v1308_v16 = vmax.f32 %v1125_v17, 0.0  ;;  %v1127_v7 = vadd.f32 %v1126_v48, %v3253_v49  ;;  %v1239_v9 = vpop.f32.mrf.mxu0 }
 0x37b   : > { %v1463_v52 = vmax.f32 %v1462_v8, %v1401_v4  ;;  %v1403_v11 = vsel %vm2942_vm7, %v1307_v41, 0.0  ;;  %v1310_v58 = vmax.f32 %v1238_v45, 0.0  ;;  %v1240_v13 = vadd.f32 %v1239_v9, %v3255_v5  ;;  %v1128_v18 = vpop.f32.mrf.mxu1 }
 0x37c   : > { %v1505_v42 = vmax.f32 %v1504_v12, %v1403_v11  ;;  %v1404_v43 = vsel %vm2946_vm8, %v1308_v16, 0.0  ;;  %v1309_v44 = vmax.f32 %v1127_v7, 0.0  ;;  %v1129_v47 = vadd.f32 %v1128_v18, %v3247_v19  ;;  %v1241_v50 = vpop.f32.mrf.mxu0 }
 0x37d   : > { %v1443_v53 = vmax.f32 %v1442_v15, %v1404_v43  ;;  %v1406_v61 = vsel %vm2946_vm8, %v1310_v58, 0.0  ;;  %v1311_v62 = vmax.f32 %v1240_v13, 0.0  ;;  %v1242_v57 = vadd.f32 %v1241_v50, %v3250_v21  ;;  %v1130_v6 = vpop.f32.mrf.mxu1 }
 0x37e   : > { %v1485_v54 = vmax.f32 %v1484_v59, %v1406_v61  ;;  %v1405_v1 = vsel %vm2946_vm8, %v1309_v44, 0.0  ;;  %v1312_v55 = vmax.f32 %v1129_v47, 0.0  ;;  %v1131_v8 = vadd.f32 %v1130_v6, %v3253_v49  ;;  %v1243_v10 = vpop.f32.mrf.mxu0 }
 0x37f   : > { %v1464_v3 = vmax.f32 %v1463_v52, %v1405_v1  ;;  %v1407_v14 = vsel %vm2946_vm8, %v1311_v62, 0.0  ;;  %v1314_v60 = vmax.f32 %v1242_v57, 0.0  ;;  %v1244_v12 = vadd.f32 %v1243_v10, %v3255_v5  ;;  %v1134_v63 = vpop.f32.mrf.mxu1 }
 0x380   : > { %v1506_v51 = vmax.f32 %v1505_v42, %v1407_v14  ;;  %v1408_v17 = vsel %vm2950_vm9, %v1312_v55, 0.0  ;;  %v1313_v2 = vmax.f32 %v1131_v8, 0.0  ;;  %v1135_v15 = vadd.f32 %v1134_v63, %v3247_v19  ;;  %v1247_v20 = vpop.f32.mrf.mxu0 }
 0x381   : > { %v1444_v41 = vmax.f32 %v1443_v53, %v1408_v17  ;;  %v1410_v45 = vsel %vm2950_vm9, %v1314_v60, 0.0  ;;  %v1315_v48 = vmax.f32 %v1244_v12, 0.0  ;;  %v1248_v59 = vadd.f32 %v1247_v20, %v3250_v21  ;;  %v1136_v4 = vpop.f32.mrf.mxu1 }
 0x382   : > { %v1486_v16 = vmax.f32 %v1485_v54, %v1410_v45  ;;  %v1409_v7 = vsel %vm2950_vm9, %v1313_v2, 0.0  ;;  %v1316_v9 = vmax.f32 %v1135_v15, 0.0  ;;  %v1137_v52 = vadd.f32 %v1136_v4, %v3253_v49  ;;  %v1249_v11 = vpop.f32.mrf.mxu0 }
 0x383   : > { %v1465_v58 = vmax.f32 %v1464_v3, %v1409_v7  ;;  %v1411_v13 = vsel %vm2950_vm9, %v1315_v48, 0.0  ;;  %v1318_v18 = vmax.f32 %v1248_v59, 0.0  ;;  %v1250_v42 = vadd.f32 %v1249_v11, %v3255_v5  ;;  %v1138_v43 = vpop.f32.mrf.mxu1 }
 0x384   : > { %v1507_v44 = vmax.f32 %v1506_v51, %v1411_v13  ;;  %v1412_v47 = vsel %vm2954_vm10, %v1316_v9, 0.0  ;;  %v1317_v50 = vmax.f32 %v1137_v52, 0.0  ;;  %v1139_v53 = vadd.f32 %v1138_v43, %v3247_v19  ;;  %v1251_v61 = vpop.f32.mrf.mxu0 }
 0x385   : > { %v1445_v62 = vmax.f32 %v1444_v41, %v1412_v47  ;;  %v1414_v57 = vsel %vm2954_vm10, %v1318_v18, 0.0  ;;  %v1319_v6 = vmax.f32 %v1250_v42, 0.0  ;;  %v1252_v54 = vadd.f32 %v1251_v61, %v3250_v21  ;;  %v1140_v1 = vpop.f32.mrf.mxu1 }
 0x386   : > { %v1487_v55 = vmax.f32 %v1486_v16, %v1414_v57  ;;  %v1413_v8 = vsel %vm2954_vm10, %v1317_v50, 0.0  ;;  %v1320_v10 = vmax.f32 %v1139_v53, 0.0  ;;  %v1141_v3 = vadd.f32 %v1140_v1, %v3253_v49  ;;  %v1253_v14 = vpop.f32.mrf.mxu0 }
 0x387   : > { %v1466_v60 = vmax.f32 %v1465_v58, %v1413_v8  ;;  %v1415_v12 = vsel %vm2954_vm10, %v1319_v6, 0.0  ;;  %v1322_v63 = vmax.f32 %v1252_v54, 0.0  ;;  %v1254_v51 = vadd.f32 %v1253_v14, %v3255_v5  ;;  %v1144_v17 = vpop.f32.mrf.mxu1 }
 0x388   : > { %v1508_v2 = vmax.f32 %v1507_v44, %v1415_v12  ;;  %v1416_v15 = vsel %vm2958_vm11, %v1320_v10, 0.0  ;;  %v1321_v20 = vmax.f32 %v1141_v3, 0.0  ;;  %v1145_v41 = vadd.f32 %v1144_v17, %v3247_v19  ;;  %v1257_v45 = vpop.f32.mrf.mxu0 }
 0x389   : > { %v1446_v48 = vmax.f32 %v1445_v62, %v1416_v15  ;;  %v1418_v59 = vsel %vm2958_vm11, %v1322_v63, 0.0  ;;  %v1323_v4 = vmax.f32 %v1254_v51, 0.0  ;;  %v1258_v16 = vadd.f32 %v1257_v45, %v3250_v21  ;;  %v1146_v7 = vpop.f32.mrf.mxu1 }
 0x38a   : > { %v1488_v9 = vmax.f32 %v1487_v55, %v1418_v59  ;;  %v1417_v52 = vsel %vm2958_vm11, %v1321_v20, 0.0  ;;  %v1324_v11 = vmax.f32 %v1145_v41, 0.0  ;;  %v1147_v58 = vadd.f32 %v1146_v7, %v3253_v49  ;;  %v1259_v13 = vpop.f32.mrf.mxu0 }
 0x38b   : > { %v1467_v18 = vmax.f32 %v1466_v60, %v1417_v52  ;;  %v1419_v42 = vsel %vm2958_vm11, %v1323_v4, 0.0  ;;  %v1326_v43 = vmax.f32 %v1258_v16, 0.0  ;;  %v1260_v44 = vadd.f32 %v1259_v13, %v3255_v5  ;;  %v1148_v47 = vpop.f32.mrf.mxu1 }
 0x38c   : > { %v1509_v50 = vmax.f32 %v1508_v2, %v1419_v42  ;;  %v1420_v53 = vsel %vm2962_vm12, %v1324_v11, 0.0  ;;  %v1325_v61 = vmax.f32 %v1147_v58, 0.0  ;;  %v1149_v62 = vadd.f32 %v1148_v47, %v3247_v19  ;;  %v1261_v57 = vpop.f32.mrf.mxu0 }
 0x38d   : > { %v1447_v6 = vmax.f32 %v1446_v48, %v1420_v53  ;;  %v1422_v54 = vsel %vm2962_vm12, %v1326_v43, 0.0  ;;  %v1327_v1 = vmax.f32 %v1260_v44, 0.0  ;;  %v1262_v55 = vadd.f32 %v1261_v57, %v3250_v21  ;;  %v1150_v8 = vpop.f32.mrf.mxu1 }
 0x38e   : > { %v1489_v10 = vmax.f32 %v1488_v9, %v1422_v54  ;;  %v1421_v3 = vsel %vm2962_vm12, %v1325_v61, 0.0  ;;  %v1328_v14 = vmax.f32 %v1149_v62, 0.0  ;;  %v1151_v60 = vadd.f32 %v1150_v8, %v3253_v49  ;;  %v1263_v12 = vpop.f32.mrf.mxu0 }
 0x38f   : > { %v1468_v63 = vmax.f32 %v1467_v18, %v1421_v3  ;;  %v1423_v51 = vsel %vm2962_vm12, %v1327_v1, 0.0  ;;  %v1330_v17 = vmax.f32 %v1262_v55, 0.0  ;;  %v1264_v2 = vadd.f32 %v1263_v12, %v3255_v5  ;;  %v1154_v15 = vpop.f32.mrf.mxu1 }
 0x390   : > { %v1510_v20 = vmax.f32 %v1509_v50, %v1423_v51  ;;  %v1424_v41 = vsel %vm2966_vm13, %v1328_v14, 0.0  ;;  %v1329_v45 = vmax.f32 %v1151_v60, 0.0  ;;  %v1155_v48 = vadd.f32 %v1154_v15, %v3247_v19  ;;  %v1267_v59 = vpop.f32.mrf.mxu0 }
 0x391   : > { %v1448_v4 = vmax.f32 %v1447_v6, %v1424_v41  ;;  %v1426_v16 = vsel %vm2966_vm13, %v1330_v17, 0.0  ;;  %v1331_v7 = vmax.f32 %v1264_v2, 0.0  ;;  %v1268_v9 = vadd.f32 %v1267_v59, %v3250_v21  ;;  %v1156_v52 = vpop.f32.mrf.mxu1 }
 0x392   : > { %v1490_v11 = vmax.f32 %v1489_v10, %v1426_v16  ;;  %v1425_v58 = vsel %vm2966_vm13, %v1329_v45, 0.0  ;;  %v1332_v13 = vmax.f32 %v1155_v48, 0.0  ;;  %v1157_v18 = vadd.f32 %v1156_v52, %v3253_v49  ;;  %v1269_v42 = vpop.f32.mrf.mxu0 }
 0x393   : > { %v1469_v43 = vmax.f32 %v1468_v63, %v1425_v58  ;;  %v1427_v44 = vsel %vm2966_vm13, %v1331_v7, 0.0  ;;  %v1334_v47 = vmax.f32 %v1268_v9, 0.0  ;;  %v1270_v50 = vadd.f32 %v1269_v42, %v3255_v5  ;;  %v1158_v53 = vpop.f32.mrf.mxu1 }
 0x394   : > { %v1511_v61 = vmax.f32 %v1510_v20, %v1427_v44  ;;  %v1428_v62 = vsel %vm2973_vm14, %v1332_v13, 0.0  ;;  %v1333_v57 = vmax.f32 %v1157_v18, 0.0  ;;  %v1159_v6 = vadd.f32 %v1158_v53, %v3247_v19  ;;  %v1271_v54 = vpop.f32.mrf.mxu0 }
 0x395   : > { %v1449_v1 = vmax.f32 %v1448_v4, %v1428_v62  ;;  %v1430_v55 = vsel %vm2973_vm14, %v1334_v47, 0.0  ;;  %v1335_v8 = vmax.f32 %v1270_v50, 0.0  ;;  %v1272_v10 = vadd.f32 %v1271_v54, %v3250_v21  ;;  %v1160_v3 = vpop.f32.mrf.mxu1 }
 0x396   : > { %v1491_v14 = vmax.f32 %v1490_v11, %v1430_v55  ;;  %v1429_v60 = vsel %vm2973_vm14, %v1333_v57, 0.0  ;;  %v1336_v12 = vmax.f32 %v1159_v6, 0.0  ;;  %v1161_v63 = vadd.f32 %v1160_v3, %v3253_v49  ;;  %v1273_v51 = vpop.f32.mrf.mxu0 }
 0x397   : > { %v1470_v17 = vmax.f32 %v1469_v43, %v1429_v60  ;;  %v1431_v19 = vsel %vm2973_vm14, %v1335_v8, 0.0  ;;  %v1338_v2 = vmax.f32 %v1272_v10, 0.0  ;;  %v1274_v15 = vadd.f32 %v1273_v51, %v3255_v5  ;;  %v1804_v20 = vpop.f32.mrf.mxu1 }
 0x398   : > { %v1512_v41 = vmax.f32 %v1511_v61, %v1431_v19  ;;  %v1432_v21 = vsel %vm3796_vm15, %v1336_v12, 0.0  ;;  %v1337_v45 = vmax.f32 %v1161_v63, 0.0  ;;  %v1805_v48 = vadd.f32 %v1804_v20, %v3266_v28  ;;  %v1917_v59 = vpop.f32.mrf.mxu0 }
 0x399   : > { %v1450_v4 = vmax.f32 %v1449_v1, %v1432_v21  ;;  %v1434_v49 = vsel %vm3796_vm15, %v1338_v2, 0.0  ;;  %v1339_v16 = vmax.f32 %v1274_v15, 0.0  ;;  %v1918_v7 = vadd.f32 %v1917_v59, %v3273_v38  ;;  %v1806_v9 = vpop.f32.mrf.mxu1 }
 0x39a   : > { %v1492_v52 = vmax.f32 %v1491_v14, %v1434_v49  ;;  %v1433_v5 = vsel %vm3796_vm15, %v1337_v45, 0.0  ;;  %v1996_v11 = vmax.f32 %v1805_v48, 0.0  ;;  %v1807_v58 = vadd.f32 %v1806_v9, %v3269_v37  ;;  %v1919_v13 = vpop.f32.mrf.mxu0 }
 0x39b   : > { %v1451_v18 = vrot.slane %v1450_v4, 4  ;;  %v1471_v42 = vmax.f32 %v1470_v17, %v1433_v5  ;;  %v1435_v43 = vsel %vm3796_vm15, %v1339_v16, 0.0  ;;  %v1998_v44 = vmax.f32 %v1918_v7, 0.0  ;;  %v1808_v47 = vpop.f32.mrf.mxu1 }
 0x39c   : > { %v1493_v50 = vrot.slane %v1492_v52, 4  ;;  %v1513_v53 = vmax.f32 %v1512_v41, %v1435_v43  ;;  %v3471_v61 = vsel %vm2911_vm0, %v1996_v11, 0.0  ;;  %v1997_v62 = vmax.f32 %v1807_v58, 0.0  ;;  %v1921_v57 = vpop.f32.mrf.mxu0 }
 0x39d   : > { %v1452_v6 = vmax.f32 %v1450_v4, %v1451_v18  ;;  %v1472_v54 = vrot.slane %v1471_v42, 4  ;;  %v3475_v1 = vsel %vm2911_vm0, %v1998_v44, 0.0  ;;  %v1920_v55 = vadd.f32 %v1919_v13, %v3275_v46  ;;  %v1810_v8 = vpop.f32.mrf.mxu1 }
 0x39e   : > { %v1494_v10 = vmax.f32 %v1492_v52, %v1493_v50  ;;  %v1514_v3 = vrot.slane %v1513_v53, 4  ;;  %v3480_v14 = vsel %vm2911_vm0, %v1997_v62, 0.0  ;;  %v1809_v60 = vadd.f32 %v1808_v47, %v3266_v28  ;;  %v1923_v12 = vpop.f32.mrf.mxu0 }
 0x39f   : > { %v1453_v63 = vrot.slane %v1452_v6, 2  ;;  %v1473_v51 = vmax.f32 %v1471_v42, %v1472_v54  ;;  %v1999_v17 = vmax.f32 %v1920_v55, 0.0  ;;  %v1922_v19 = vadd.f32 %v1921_v57, %v3273_v38  ;;  %v1814_v2 = vpop.f32.mrf.mxu1 }
 0x3a0   : > { %v1495_v15 = vrot.slane %v1494_v10, 2  ;;  %v1515_v20 = vmax.f32 %v1513_v53, %v1514_v3  ;;  %v2000_v41 = vmax.f32 %v1809_v60, 0.0  ;;  %v1811_v21 = vadd.f32 %v1810_v8, %v3269_v37  ;;  %v1927_v45 = vpop.f32.mrf.mxu0 }
 0x3a1   : > { %v1454_v48 = vmax.f32 %v1452_v6, %v1453_v63  ;;  %v1474_v59 = vrot.slane %v1473_v51, 2  ;;  %v2063_v4 = vsel %vm2911_vm0, %v1999_v17, 0.0  ;;  %v2002_v49 = vmax.f32 %v1922_v19, 0.0  ;;  %v1816_v16 = vpop.f32.mrf.mxu1 }
 0x3a2   : > { %v1496_v7 = vmax.f32 %v1494_v10, %v1495_v15  ;;  %v1516_v9 = vrot.slane %v1515_v20, 2  ;;  %v2064_v52 = vsel %vm2915_vm1, %v2000_v41, 0.0  ;;  %v2001_v5 = vmax.f32 %v1811_v21, 0.0  ;;  %v1929_v11 = vpop.f32.mrf.mxu0 }
 0x3a3   : > { %v1455_v58 = vrot.slane %v1454_v48, 1  ;;  %v1475_v13 = vmax.f32 %v1473_v51, %v1474_v59  ;;  %v2124_v18 = vmax.f32 %v3471_v61, %v2064_v52  ;;  %v2066_v42 = vsel %vm2915_vm1, %v2002_v49, 0.0  ;;  %v1818_v43 = vpop.f32.mrf.mxu1 }
 0x3a4   : > { %v1497_v44 = vrot.slane %v1496_v7, 1  ;;  %v1517_v22 = vmax.f32 %v1515_v20, %v1516_v9  ;;  %v2166_v47 = vmax.f32 %v3475_v1, %v2066_v42  ;;  %v2065_v50 = vsel %vm2915_vm1, %v2001_v5, 0.0  ;;  %v1931_v53 = vpop.f32.mrf.mxu0 }
 0x3a5   : > { %v1456_v62 = vmax.f32 %v1454_v48, %v1455_v58  ;;  %v1476_v57 = vrot.slane %v1475_v13, 1  ;;  %v2145_v6 = vmax.f32 %v3480_v14, %v2065_v50  ;;  %v1924_v54 = vadd.f32 %v1923_v12, %v3275_v46  ;;  %v1820_v55 = vpop.f32.mrf.mxu1 }
 0x3a6   : > { %v3497_v61 = vmax.f32 %v1496_v7, %v1497_v44  ;;  %v1518_v8 = vrot.slane %v1517_v22, 1  ;;  %v1815_v10 = vadd.f32 %v1814_v2, %v3266_v28  ;;  %v1928_v3 = vadd.f32 %v1927_v45, %v3273_v38  ;;  %v1933_v60 = vpop.f32.mrf.mxu0 }
 0x3a7   : > { %v1477_v1 = vmax.f32 %v1475_v13, %v1476_v57  ;;  %v2003_v63 = vmax.f32 %v1924_v54, 0.0  ;;  %v1817_v51 = vadd.f32 %v1816_v16, %v3269_v37  ;;  %v1930_v17 = vadd.f32 %v1929_v11, %v3275_v46  ;;  %v1824_v19 = vpop.f32.mrf.mxu1 }
 0x3a8   : > { %v3503_v15 = vmax.f32 %v1517_v22, %v1518_v8  ;;  %v2004_v14 = vmax.f32 %v1815_v10, 0.0  ;;  %v2006_v12 = vmax.f32 %v1928_v3, 0.0  ;;  %v1819_v20 = vadd.f32 %v1818_v43, %v3266_v28  ;;  %v1937_v41 = vpop.f32.mrf.mxu0 }
 0x3a9   : > { %v1525_v21 = vcombine.low %v1456_v62, %v1477_v1  ;;  %v2067_v2 = vsel %vm2915_vm1, %v2003_v63, 0.0  ;;  %v2005_v45 = vmax.f32 %v1817_v51, 0.0  ;;  %v2007_v48 = vmax.f32 %v1930_v17, 0.0  ;;  %v1826_v59 = vpop.f32.mrf.mxu1 }
 0x3aa   : > { %v1526_v49 = vcombine.low %v3497_v61, %v3503_v15  ;;  %v2187_v16 = vmax.f32 %v2063_v4, %v2067_v2  ;;  %v2068_v7 = vsel %vm2919_vm2, %v2004_v14, 0.0  ;;  %v2070_v9 = vsel %vm2919_vm2, %v2006_v12, 0.0  ;;  %v1939_v52 = vpop.f32.mrf.mxu0 }
 0x3ab   : > { %v3515_v5 = vrot.slane %v1525_v21, %v3281_v56  ;;  %v2125_v11 = vmax.f32 %v2124_v18, %v2068_v7  ;;  %v2069_v23 = vsel %vm2919_vm2, %v2005_v45, 0.0  ;;  %v1828_v58 = vpop.f32.mrf.mxu1  ;;  %v2167_v13 = vmax.f32 %v2166_v47, %v2070_v9 }
 0x3ac   : > { %v2146_v42 = vmax.f32 %v2145_v6, %v2069_v23  ;;  %v2071_v4 = vsel %vm2919_vm2, %v2007_v48, 0.0  ;;  %v2008_v43 = vmax.f32 %v1819_v20, 0.0  ;;  %v1941_v44 = vpop.f32.mrf.mxu0  ;;  %v1932_v50 = vadd.f32 %v1931_v53, %v3273_v38 }
 0x3ad   : > { %v2188_v22 = vmax.f32 %v2187_v16, %v2071_v4  ;;  %v1821_v62 = vadd.f32 %v1820_v55, %v3269_v37  ;;  %v1934_v57 = vadd.f32 %v1933_v60, %v3275_v46  ;;  %v1830_v54 = vpop.f32.mrf.mxu1  ;;  %v1825_v8 = vadd.f32 %v1824_v19, %v3266_v28 }
 0x3ae   : > { %v2072_v18 = vsel %vm2923_vm3, %v2008_v43, 0.0  ;;  %v1938_v47 = vadd.f32 %v1937_v41, %v3273_v38  ;;  %v1827_v24 = vadd.f32 %v1826_v59, %v3269_v37  ;;  %v1943_v6 = vpop.f32.mrf.mxu0  ;;  %v2010_v3 = vmax.f32 %v1932_v50, 0.0 }
 0x3af   : > { %v2126_v10 = vmax.f32 %v2125_v11, %v2072_v18  ;;  %v2009_v1 = vmax.f32 %v1821_v62, 0.0  ;;  %v2011_v63 = vmax.f32 %v1934_v57, 0.0  ;;  %v1834_v53 = vpop.f32.mrf.mxu1  ;;  %v2012_v51 = vmax.f32 %v1825_v8, 0.0 }
 0x3b0   : > { %v2014_v55 = vmax.f32 %v1938_v47, 0.0  ;;  %v2013_v17 = vmax.f32 %v1827_v24, 0.0  ;;  %v1940_v60 = vadd.f32 %v1939_v52, %v3275_v46  ;;  %v1947_v14 = vpop.f32.mrf.mxu0  ;;  %v2074_v12 = vsel %vm2923_vm3, %v2010_v3, 0.0 }
 0x3b1   : > { %v2073_v19 = vsel %vm2923_vm3, %v2009_v1, 0.0  ;;  %v2075_v20 = vsel %vm2923_vm3, %v2011_v63, 0.0  ;;  %v1829_v41 = vadd.f32 %v1828_v58, %v3266_v28  ;;  %v1836_v21 = vpop.f32.mrf.mxu1  ;;  %v2168_v2 = vmax.f32 %v2167_v13, %v2074_v12 }
 0x3b2   : > { %v2147_v45 = vmax.f32 %v2146_v42, %v2073_v19  ;;  %v2189_v48 = vmax.f32 %v2188_v22, %v2075_v20  ;;  %v2076_v59 = vsel %vm2927_vm4, %v2012_v51, 0.0  ;;  %v1949_v16 = vpop.f32.mrf.mxu0  ;;  %v2078_v9 = vsel %vm2927_vm4, %v2014_v55, 0.0 }
 0x3b3   : > { %v2127_v7 = vmax.f32 %v2126_v10, %v2076_v59  ;;  %v2077_v52 = vsel %vm2927_vm4, %v2013_v17, 0.0  ;;  %v2015_v11 = vmax.f32 %v1940_v60, 0.0  ;;  %v1838_v25 = vpop.f32.mrf.mxu1  ;;  %v2169_v23 = vmax.f32 %v2168_v2, %v2078_v9 }
 0x3b4   : > { %v2148_v4 = vmax.f32 %v2147_v45, %v2077_v52  ;;  %v2016_v58 = vmax.f32 %v1829_v41, 0.0  ;;  %v1942_v13 = vadd.f32 %v1941_v44, %v3273_v38  ;;  %v1951_v42 = vpop.f32.mrf.mxu0  ;;  %v1831_v22 = vadd.f32 %v1830_v54, %v3269_v37 }
 0x3b5   : > { %v2079_v43 = vsel %vm2927_vm4, %v2015_v11, 0.0  ;;  %v1944_v50 = vadd.f32 %v1943_v6, %v3275_v46  ;;  %v1835_v62 = vadd.f32 %v1834_v53, %v3266_v28  ;;  %v1840_v57 = vpop.f32.mrf.mxu1  ;;  %v1948_v24 = vadd.f32 %v1947_v14, %v3273_v38 }
 0x3b6   : > { %v2190_v18 = vmax.f32 %v2189_v48, %v2079_v43  ;;  %v2080_v8 = vsel %vm2931_vm5, %v2016_v58, 0.0  ;;  %v2018_v47 = vmax.f32 %v1942_v13, 0.0  ;;  %v1953_v10 = vpop.f32.mrf.mxu0  ;;  %v2017_v3 = vmax.f32 %v1831_v22, 0.0 }
 0x3b7   : > { %v2128_v44 = vmax.f32 %v2127_v7, %v2080_v8  ;;  %v2019_v1 = vmax.f32 %v1944_v50, 0.0  ;;  %v2020_v26 = vmax.f32 %v1835_v62, 0.0  ;;  %v1844_v63 = vpop.f32.mrf.mxu1  ;;  %v2022_v6 = vmax.f32 %v1948_v24, 0.0 }
 0x3b8   : > { %v2082_v54 = vsel %vm2931_vm5, %v2018_v47, 0.0  ;;  %v1837_v53 = vadd.f32 %v1836_v21, %v3269_v37  ;;  %v1950_v51 = vadd.f32 %v1949_v16, %v3275_v46  ;;  %v1957_v55 = vpop.f32.mrf.mxu0  ;;  %v3560_v17 = vrot.slane %v1526_v49, %v3281_v56 }
 0x3b9   : > { %v2081_v60 = vsel %vm2931_vm5, %v2017_v3, 0.0  ;;  %v2083_v14 = vsel %vm2931_vm5, %v2019_v1, 0.0  ;;  %v2084_v12 = vsel %vm2938_vm6, %v2020_v26, 0.0  ;;  %v1846_v19 = vpop.f32.mrf.mxu1  ;;  %v2170_v20 = vmax.f32 %v2169_v23, %v2082_v54 }
 0x3ba   : > { %v2149_v41 = vmax.f32 %v2148_v4, %v2081_v60  ;;  %v2191_v21 = vmax.f32 %v2190_v18, %v2083_v14  ;;  %v2129_v2 = vmax.f32 %v2128_v44, %v2084_v12  ;;  %v1959_v45 = vpop.f32.mrf.mxu0  ;;  %v2086_v61 = vsel %vm2938_vm6, %v2022_v6, 0.0 }
 0x3bb   : > { %v2021_v15 = vmax.f32 %v1837_v53, 0.0  ;;  %v2023_v49 = vmax.f32 %v1950_v51, 0.0  ;;  %v1839_v48 = vadd.f32 %v1838_v25, %v3266_v28  ;;  %v1848_v59 = vpop.f32.mrf.mxu1  ;;  %v1952_v27 = vadd.f32 %v1951_v42, %v3273_v38 }
 0x3bc   : > { %v1841_v16 = vadd.f32 %v1840_v57, %v3269_v37  ;;  %v1954_v7 = vadd.f32 %v1953_v10, %v3275_v46  ;;  %v1845_v9 = vadd.f32 %v1844_v63, %v3266_v28  ;;  %v1961_v52 = vpop.f32.mrf.mxu0  ;;  %v1958_v58 = vadd.f32 %v1957_v55, %v3273_v38 }
 0x3bd   : > { %v2085_v11 = vsel %vm2938_vm6, %v2021_v15, 0.0  ;;  %v2087_v23 = vsel %vm2938_vm6, %v2023_v49, 0.0  ;;  %v2024_v4 = vmax.f32 %v1839_v48, 0.0  ;;  %v1850_v25 = vpop.f32.mrf.mxu1  ;;  %v2171_v13 = vmax.f32 %v2170_v20, %v2086_v61 }
 0x3be   : > { %v2150_v43 = vmax.f32 %v2149_v41, %v2085_v11  ;;  %v2026_v42 = vmax.f32 %v1952_v27, 0.0  ;;  %v2025_v22 = vmax.f32 %v1841_v16, 0.0  ;;  %v1963_v50 = vpop.f32.mrf.mxu0  ;;  %v2027_v57 = vmax.f32 %v1954_v7, 0.0 }
 0x3bf   : > { %v2088_v62 = vsel %vm2942_vm7, %v2024_v4, 0.0  ;;  %v2028_v18 = vmax.f32 %v1845_v9, 0.0  ;;  %v2030_v8 = vmax.f32 %v1958_v58, 0.0  ;;  %v1854_v47 = vpop.f32.mrf.mxu1  ;;  %v2192_v24 = vmax.f32 %v2191_v21, %v2087_v23 }
 0x3c0   : > { %v2090_v29 = vsel %vm2942_vm7, %v2026_v42, 0.0  ;;  %v2089_v10 = vsel %vm2942_vm7, %v2025_v22, 0.0  ;;  %v1847_v44 = vadd.f32 %v1846_v19, %v3269_v37  ;;  %v1967_v3 = vpop.f32.mrf.mxu0  ;;  %v2130_v1 = vmax.f32 %v2129_v2, %v2088_v62 }
 0x3c1   : > { %v2172_v26 = vmax.f32 %v2171_v13, %v2090_v29  ;;  %v2091_v63 = vsel %vm2942_vm7, %v2027_v57, 0.0  ;;  %v2092_v54 = vsel %vm2946_vm8, %v2028_v18, 0.0  ;;  %v1856_v6 = vpop.f32.mrf.mxu1  ;;  %v2151_v53 = vmax.f32 %v2150_v43, %v2089_v10 }
 0x3c2   : > { %v2193_v51 = vmax.f32 %v2192_v24, %v2091_v63  ;;  %v2094_v55 = vsel %vm2946_vm8, %v2030_v8, 0.0  ;;  %v2029_v60 = vmax.f32 %v1847_v44, 0.0  ;;  %v1969_v14 = vpop.f32.mrf.mxu0  ;;  %v2131_v12 = vmax.f32 %v2130_v1, %v2092_v54 }
 0x3c3   : > { %v1960_v19 = vadd.f32 %v1959_v45, %v3275_v46  ;;  %v1849_v20 = vadd.f32 %v1848_v59, %v3266_v28  ;;  %v1962_v41 = vadd.f32 %v1961_v52, %v3273_v38  ;;  %v1858_v30 = vpop.f32.mrf.mxu1  ;;  %v2173_v21 = vmax.f32 %v2172_v26, %v2094_v55 }
 0x3c4   : > { %v1851_v2 = vadd.f32 %v1850_v25, %v3269_v37  ;;  %v1964_v61 = vadd.f32 %v1963_v50, %v3275_v46  ;;  %v1855_v15 = vadd.f32 %v1854_v47, %v3266_v28  ;;  %v1971_v49 = vpop.f32.mrf.mxu0  ;;  %v2093_v48 = vsel %vm2946_vm8, %v2029_v60, 0.0 }
 0x3c5   : > { %v2031_v27 = vmax.f32 %v1960_v19, 0.0  ;;  %v2032_v16 = vmax.f32 %v1849_v20, 0.0  ;;  %v2034_v7 = vmax.f32 %v1962_v41, 0.0  ;;  %v1860_v45 = vpop.f32.mrf.mxu1  ;;  %v1968_v52 = vadd.f32 %v1967_v3, %v3273_v38 }
 0x3c6   : > { %v2033_v9 = vmax.f32 %v1851_v2, 0.0  ;;  %v2035_v59 = vmax.f32 %v1964_v61, 0.0  ;;  %v2036_v11 = vmax.f32 %v1855_v15, 0.0  ;;  %v1973_v23 = vpop.f32.mrf.mxu0  ;;  %v1857_v13 = vadd.f32 %v1856_v6, %v3269_v37 }
 0x3c7   : > { %v2095_v4 = vsel %vm2946_vm8, %v2031_v27, 0.0  ;;  %v2096_v58 = vsel %vm2950_vm9, %v2032_v16, 0.0  ;;  %v2098_v25 = vsel %vm2950_vm9, %v2034_v7, 0.0  ;;  %v1864_v43 = vpop.f32.mrf.mxu1  ;;  %v2152_v42 = vmax.f32 %v2151_v53, %v2093_v48 }
 0x3c8   : > { %v2194_v22 = vmax.f32 %v2193_v51, %v2095_v4  ;;  %v2132_v50 = vmax.f32 %v2131_v12, %v2096_v58  ;;  %v2097_v62 = vsel %vm2950_vm9, %v2033_v9, 0.0  ;;  %v1977_v57 = vpop.f32.mrf.mxu0  ;;  %v2174_v18 = vmax.f32 %v2173_v21, %v2098_v25 }
 0x3c9   : > { %v2099_v31 = vsel %vm2950_vm9, %v2035_v59, 0.0  ;;  %v2100_v8 = vsel %vm2954_vm10, %v2036_v11, 0.0  ;;  %v2038_v47 = vmax.f32 %v1968_v52, 0.0  ;;  %v1866_v24 = vpop.f32.mrf.mxu1  ;;  %v2153_v29 = vmax.f32 %v2152_v42, %v2097_v62 }
 0x3ca   : > { %v2195_v10 = vmax.f32 %v2194_v22, %v2099_v31  ;;  %v2037_v44 = vmax.f32 %v1857_v13, 0.0  ;;  %v1970_v3 = vadd.f32 %v1969_v14, %v3275_v46  ;;  %v1979_v1 = vpop.f32.mrf.mxu0  ;;  %v1859_v63 = vadd.f32 %v1858_v30, %v3266_v28 }
 0x3cb   : > { %v2102_v26 = vsel %vm2954_vm10, %v2038_v47, 0.0  ;;  %v1972_v54 = vadd.f32 %v1971_v49, %v3273_v38  ;;  %v1861_v32 = vadd.f32 %v1860_v45, %v3269_v37  ;;  %v1868_v6 = vpop.f32.mrf.mxu1  ;;  %v2133_v53 = vmax.f32 %v2132_v50, %v2100_v8 }
 0x3cc   : > { %v2101_v51 = vsel %vm2954_vm10, %v2037_v44, 0.0  ;;  %v2039_v55 = vmax.f32 %v1970_v3, 0.0  ;;  %v1974_v60 = vadd.f32 %v1973_v23, %v3275_v46  ;;  %v1981_v12 = vpop.f32.mrf.mxu0  ;;  %v2175_v14 = vmax.f32 %v2174_v18, %v2102_v26 }
 0x3cd   : > { %v2040_v19 = vmax.f32 %v1859_v63, 0.0  ;;  %v2042_v20 = vmax.f32 %v1972_v54, 0.0  ;;  %v2041_v41 = vmax.f32 %v1861_v32, 0.0  ;;  %v1870_v21 = vpop.f32.mrf.mxu1  ;;  %v1865_v61 = vadd.f32 %v1864_v43, %v3266_v28 }
 0x3ce   : > { %v2103_v30 = vsel %vm2954_vm10, %v2039_v55, 0.0  ;;  %v2043_v2 = vmax.f32 %v1974_v60, 0.0  ;;  %v1978_v15 = vadd.f32 %v1977_v57, %v3273_v38  ;;  %v2154_v49 = vmax.f32 %v2153_v29, %v2101_v51  ;;  %v1983_v11 = vpop.f32.mrf.mxu0 }
 0x3cf   : > { %v2104_v48 = vsel %vm2958_vm11, %v2040_v19, 0.0  ;;  %v2106_v27 = vsel %vm2958_vm11, %v2042_v20, 0.0  ;;  %v2105_v16 = vsel %vm2958_vm11, %v2041_v41, 0.0  ;;  %v1874_v7 = vpop.f32.mrf.mxu1  ;;  %v2196_v45 = vmax.f32 %v2195_v10, %v2103_v30 }
 0x3d0   : > { %v2134_v9 = vmax.f32 %v2133_v53, %v2104_v48  ;;  %v2176_v33 = vmax.f32 %v2175_v14, %v2106_v27  ;;  %v2107_v59 = vsel %vm2958_vm11, %v2043_v2, 0.0  ;;  %v2155_v52 = vmax.f32 %v2154_v49, %v2105_v16 }
 0x3d1   : > { %v2044_v23 = vmax.f32 %v1865_v61, 0.0  ;;  %v2046_v4 = vmax.f32 %v1978_v15, 0.0  ;;  %v1867_v58 = vadd.f32 %v1866_v24, %v3269_v37  ;;  %v1876_v25 = vpop.f32.mrf.mxu1  ;;  %v1980_v13 = vadd.f32 %v1979_v1, %v3275_v46 }
 0x3d2   : > { %v1869_v43 = vadd.f32 %v1868_v6, %v3266_v28  ;;  %v1982_v42 = vadd.f32 %v1981_v12, %v3273_v38  ;;  %v1871_v22 = vadd.f32 %v1870_v21, %v3269_v37  ;;  %v2197_v50 = vmax.f32 %v2196_v45, %v2107_v59 }
 0x3d3   : > { %v2108_v34 = vsel %vm2962_vm12, %v2044_v23, 0.0  ;;  %v2045_v62 = vmax.f32 %v1867_v58, 0.0  ;;  %v1984_v57 = vadd.f32 %v1983_v11, %v3275_v46  ;;  %v1878_v18 = vpop.f32.mrf.mxu1  ;;  %v2110_v8 = vsel %vm2962_vm12, %v2046_v4, 0.0 }
 0x3d4   : > { %v2135_v31 = vmax.f32 %v2134_v9, %v2108_v34  ;;  %v2047_v47 = vmax.f32 %v1980_v13, 0.0  ;;  %v2048_v24 = vmax.f32 %v1869_v43, 0.0  ;;  %v2050_v10 = vmax.f32 %v1982_v42, 0.0 }
 0x3d5   : > { %v2109_v29 = vsel %vm2962_vm12, %v2045_v62, 0.0  ;;  %v2049_v44 = vmax.f32 %v1871_v22, 0.0  ;;  %v2051_v3 = vmax.f32 %v1984_v57, 0.0  ;;  %v1880_v1 = vpop.f32.mrf.mxu1  ;;  %v1875_v32 = vadd.f32 %v1874_v7, %v3266_v28 }
 0x3d6   : > { %v2156_v26 = vmax.f32 %v2155_v52, %v2109_v29  ;;  %v2111_v63 = vsel %vm2962_vm12, %v2047_v47, 0.0  ;;  %v2112_v54 = vsel %vm2966_vm13, %v2048_v24, 0.0  ;;  %v2177_v6 = vmax.f32 %v2176_v33, %v2110_v8  ;;  %v1520_v52 = vld [vmem:[%s3126_s13] sm:$0xf] }
 0x3d7   : > { %v2198_v53 = vmax.f32 %v2197_v50, %v2111_v63  ;;  %v2113_v51 = vsel %vm2966_vm13, %v2049_v44, 0.0  ;;  %v1987_v55 = vpop.f32.mrf.mxu1  ;;  %v2136_v60 = vmax.f32 %v2135_v31, %v2112_v54  ;;  %v2114_v12 = vsel %vm2966_vm13, %v2050_v10, 0.0 }
 0x3d8   : > { %v2157_v14 = vmax.f32 %v2156_v26, %v2113_v51  ;;  %v2052_v19 = vmax.f32 %v1875_v32, 0.0  ;;  %v2115_v35 = vsel %vm2966_vm13, %v2051_v3, 0.0  ;;  %v1877_v20 = vadd.f32 %v1876_v25, %v3269_v37 }
 0x3d9   : > { %v1879_v41 = vadd.f32 %v1878_v18, %v3266_v28  ;;  %v1881_v21 = vadd.f32 %v1880_v1, %v3269_v37  ;;  %v1989_v30 = vpop.f32.mrf.mxu1  ;;  %v1988_v61 = vadd.f32 %v1987_v55, %v3273_v38  ;;  %v1541_v49 = vcombine.low %v3515_v5, %v3560_v17 }
 0x3da   : > { %v2116_v2 = vsel %vm2973_vm14, %v2052_v19, 0.0  ;;  %v1990_v15 = vadd.f32 %v1989_v30, %v3275_v46  ;;  %v2053_v48 = vmax.f32 %v1877_v20, 0.0  ;;  %v2178_v33 = vmax.f32 %v2177_v6, %v2114_v12 }
 0x3db   : > { %v2137_v36 = vmax.f32 %v2136_v60, %v2116_v2  ;;  %v2056_v27 = vmax.f32 %v1879_v41, 0.0  ;;  %v2057_v16 = vmax.f32 %v1881_v21, 0.0  ;;  %v1991_v7 = vpop.f32.mrf.mxu1  ;;  %v2054_v28 = vmax.f32 %v1988_v61, 0.0 }
 0x3dc   : > { %v2055_v45 = vmax.f32 %v1990_v15, 0.0  ;;  %v1992_v37 = vadd.f32 %v1991_v7, %v3273_v38  ;;  %v1548_v9 = vrot.slane %v1541_v49, %v3281_v56  ;;  %v2117_v59 = vsel %vm2973_vm14, %v2053_v48, 0.0  ;;  %v2208_v15 = vld [vmem:[%s3126_s13 + $0x4] sm:$0xf] }
 0x3dd   : > { %v2120_v11 = vsel %vm3796_vm15, %v2056_v27, 0.0  ;;  %v2121_v5 = vsel %vm3796_vm15, %v2057_v16, 0.0  ;;  %v1993_v17 = vpop.f32.mrf.mxu1  ;;  %v2199_v23 = vmax.f32 %v2198_v53, %v2115_v35  ;;  %v2158_v4 = vmax.f32 %v2157_v14, %v2117_v59 }
 0x3de   : > { %v2138_v58 = vmax.f32 %v2137_v36, %v2120_v11  ;;  %v2118_v38 = vsel %vm2973_vm14, %v2054_v28, 0.0  ;;  %v2119_v25 = vsel %vm2973_vm14, %v2055_v45, 0.0  ;;  %v2058_v13 = vmax.f32 %v1992_v37, 0.0 }
 0x3df   : > { %v1994_v43 = vadd.f32 %v1993_v17, %v3275_v46  ;;  %vm3683_vm0 = vcmp.lt.s32.totalorder %v388_v0, 512  ;;  %v2159_v50 = vmax.f32 %v2158_v4, %v2121_v5  ;;  %v2179_v34 = vmax.f32 %v2178_v33, %v2118_v38 }
 0x3e0   : > { %v2139_v22 = vrot.slane %v2138_v58, 4  ;;  %v1550_v62 = vmax.f32 %v1520_v52, %v1548_v9  ;;  %v2122_v57 = vsel %vm3796_vm15, %v2058_v13, 0.0  ;;  %v2200_v39 = vmax.f32 %v2199_v23, %v2119_v25 }
 0x3e1   : > { %v2059_v18 = vmax.f32 %v1994_v43, 0.0  ;;  %v2160_v8 = vrot.slane %v2159_v50, 4  ;;  %v2180_v47 = vmax.f32 %v2179_v34, %v2122_v57 }
 0x3e2   : > { %v2140_v31 = vmax.f32 %v2138_v58, %v2139_v22  ;;  %1555 = vst.msk [vmem:[%s3126_s13] sm:$0xf] %vm3683_vm0, %v1550_v62 }
 0x3e3   : > { %v2123_v0 = vsel %vm3796_vm15, %v2059_v18, 0.0  ;;  %v2161_v24 = vmax.f32 %v2159_v50, %v2160_v8  ;;  %v2181_v29 = vrot.slane %v2180_v47, 4 }
 0x3e4   : > { %v2141_v46 = vrot.slane %v2140_v31, 2  ;;  %v2201_v10 = vmax.f32 %v2200_v39, %v2123_v0 }
 0x3e5   : > { %v2162_v3 = vrot.slane %v2161_v24, 2  ;;  %v2182_v1 = vmax.f32 %v2180_v47, %v2181_v29 }
 0x3e6   : > { %v2142_v44 = vmax.f32 %v2140_v31, %v2141_v46  ;;  %v2202_v26 = vrot.slane %v2201_v10, 4 }
 0x3e7   : > { %v2163_v63 = vmax.f32 %v2161_v24, %v2162_v3  ;;  %v2183_v54 = vrot.slane %v2182_v1, 2 }
 0x3e8   : > { %v2203_v32 = vmax.f32 %v2201_v10, %v2202_v26  ;;  %v2143_v6 = vrot.slane %v2142_v44, 1 }
 0x3e9   : > { %v2164_v53 = vrot.slane %v2163_v63, 1  ;;  %v2184_v51 = vmax.f32 %v2182_v1, %v2183_v54 }
 0x3ea   : > { %v2204_v55 = vrot.slane %v2203_v32, 2  ;;  %v2144_v14 = vmax.f32 %v2142_v44, %v2143_v6 }
 0x3eb   : > { %v2165_v40 = vmax.f32 %v2163_v63, %v2164_v53  ;;  %v2185_v60 = vrot.slane %v2184_v51, 1 }
 0x3ec   : > { %v2205_v12 = vmax.f32 %v2203_v32, %v2204_v55 }
 0x3ed   : > { %v2213_v35 = vcombine.low %v2144_v14, %v2165_v40  ;;  %v2186_v20 = vmax.f32 %v2184_v51, %v2185_v60 }
 0x3ee   : > { %v2206_v19 = vrot.slane %v2205_v12, 1 }
 0x3ef   : > { %v2221_v30 = vrot.slane %v2213_v35, %v3281_v56 }
 0x3f0   : > { %v2207_v41 = vmax.f32 %v2205_v12, %v2206_v19 }
 0x3f2   : > { %v2214_v21 = vcombine.low %v2186_v20, %v2207_v41 }
 0x3f4   : > { %v2228_v2 = vrot.slane %v2214_v21, %v3281_v56 }
 0x3f6   : > { %v2229_v61 = vcombine.low %v2221_v30, %v2228_v2 }
 0x3f8   : > { %v2236_v49 = vrot.slane %v2229_v61, %v3281_v56 }
 0x3fa   : > { %v2238_v36 = vmax.f32 %v2208_v15, %v2236_v49 }
 0x3fc   : > { %2239 = vst.msk [vmem:[%s3126_s13 + $0x4] sm:$0xf] %vm3683_vm0, %v2238_v36 }
 0x3fd   : > { %2651 = shalt.err (!%p2648_p7)
}
 0x3fe   : > { %s2652_s16 = scalar_lea.hbm %s2255_s9, 128  ;;  %s2656_s21 = scalar_lea.hbm %s3755_s7, 256 }
 0x3ff   : > { %p2653_p8 = scmp.ne.s32.totalorder %s2255_s9, %s2652_s16  ;;  %p2657_p12 = scmp.lt.s32.totalorder %s2255_s9, %s3755_s7 }
 0x400   : > { %p2658_p13 = scmp.lt.s32.totalorder %s2656_s21, %s2652_s16 }
 0x401   : > { %p2654_p11 = pnand %p2653_p8, %p2835_p3 }
 0x402   : > { %p2659_p0 = por %p2658_p13, %p2657_p12 }
 0x403   : > { %p2655_p10 = pneg %p2654_p11 }
 0x405   : > { %p2660_p1 = pnand %p2659_p0, %p2655_p10 }
 0x407   : > { %2663 = shalt.err (!%p2660_p1)
}
 0x408   : > { %2502 = dma.vmem_to_hbm [thread:$0]  (%p2835_p3), %s2258_s18, 128, %s2255_s9, %s2241_s27  }
 0x409 PF: > { %p2514_p2 = scmp.ge.s32.totalorder %s2734_s8, 2  ;;  %s2269_s10 = sand.u32 1, %s2706_s24  }
 0x40a   : > { %s2270_s28 = scalar_lea.sflag [#allocation4], %s2269_s10 }
 0x40b   : > { %p2509_p4 = pnand %p2514_p2, %p2845_p9 }
 0x40d   : > { %p2510_p5 = pneg %p2509_p4 }
 0x40f   : > { %2701 = dma.done.wait (%p2510_p5), %s2270_s28, 128  }
 0x410   : > { %2703 = vsyncadd (%p2510_p5), %s2270_s28, 4294967168  ;;  %s21_s8 = sadd.s32 1, %s2734_s8   ;;  %s3799_s24 = smov %s2710_s25 }
 0x411   : > { %p18_p6 = scmp.ge.s32.totalorder %s21_s8, 8   ;;  %s3800_s25 = smov %s2714_s26 }
 0x412   : > { %s3801_s26 = smov %s2862_s19  ;;  %s3802_s27 = smov %s2726_s29 }
 0x413   : > { %s3803_s28 = smov %s2730_s30  ;;  %s3804_s29 = smov %s3807_s11 }
 0x414   : > { %s3805_s30 = smov %s3811_s12  ;;  %20 = sbr.rel (!%p18_p6) target bundleno = 8 (0x8), region = 92 }
 0x419   :  { %2275 = vsyncpa [#allocation3], 1 }
 0x41a   :  { %2277 = vsyncpa [#allocation3 + $0x1], 1 }
 0x41b   :  { %2278 = vsyncpa [#allocation4], 1 }
 0x41c   :  { %2280 = vsyncpa [#allocation4 + $0x1], 1 }

</bundles_post_ra>
